<compile_context>
chip_gen: v5e
topology: v5e:2x2
jax: 0.10.0
libtpu: 0.0.40
codegen_flags: <defaults>
</compile_context>

<pallas_src>
import jax
import jax.numpy as jnp
from jax import lax
from jax.experimental import pallas as pl
from jax.experimental.pallas import tpu as pltpu

BN_EPS = 1e-5
VMEM_LIMIT = 32 * 1024 * 1024  # safe on v5e/v6e/v7x


# ----------------------------------------------------------------------------
# Kernel 1: one-pass global BatchNorm statistics (sum and sum-of-squares),
#           gridded reduction with a resident (1, C) accumulator.
# ----------------------------------------------------------------------------
def bn_stats_kernel(x_ref, sum_ref, ssq_ref):
    @pl.when(pl.program_id(0) == 0)
    def _():
        sum_ref[...] = jnp.zeros_like(sum_ref)
        ssq_ref[...] = jnp.zeros_like(ssq_ref)

    x = x_ref[...].astype(jnp.float32)
    sum_ref[...] += jnp.sum(x, axis=0, keepdims=True)
    ssq_ref[...] += jnp.sum(x * x, axis=0, keepdims=True)


def _row_tile(rows, cap=256):
    # largest divisor of `rows` that is a multiple of 8 (or the full extent).
    # raise `cap` (e.g. 2048+) for large activations to approach HBM roofline.
    for t in range(min(rows, cap), 0, -1):
        if rows % t == 0 and (t % 8 == 0 or t == rows):
            return t
    return rows


def batch_stats(x_rc):
    """x_rc: (R, C) f32 -> per-channel (mean, biased var), each (1, C) f32."""
    rows, chans = x_rc.shape
    tr = _row_tile(rows)
    s, q = pl.pallas_call(
        bn_stats_kernel,
        grid=(rows // tr,),
        in_specs=[pl.BlockSpec((tr, chans), lambda i: (i, 0))],
        out_specs=[pl.BlockSpec((1, chans), lambda i: (0, 0)),
                   pl.BlockSpec((1, chans), lambda i: (0, 0))],
        out_shape=[jax.ShapeDtypeStruct((1, chans), jnp.float32),
                   jax.ShapeDtypeStruct((1, chans), jnp.float32)],
        compiler_params=pltpu.CompilerParams(
            dimension_semantics=("arbitrary",),
            vmem_limit_bytes=VMEM_LIMIT),
    )(x_rc)
    mean = s / rows
    var = q / rows - mean * mean          # biased variance (PyTorch training BN)
    return mean, var


# ----------------------------------------------------------------------------
# Kernel 2: fused  normalize -> ReLU -> 3x3 conv (banded matmuls) -> + bias.
# One grid step = one image.  H halo handled via a zero-bordered VMEM scratch;
# W halo is encoded in the banded weight matrices.
# ----------------------------------------------------------------------------
def fused_bn_relu_conv3x3_kernel(x_ref, scale_ref, shift_ref, m_ref, bias_ref,
                                 o_ref, pad_ref):
    # x_ref    : (1, H, W*Cin)  f32      one image, NHWC flattened over (W, C)
    # scale_ref: (1, W*Cin)     f32      gamma * rsqrt(var+eps), tiled over W
    # shift_ref: (1, W*Cin)     f32      beta - mean*scale,       tiled over W
    # m_ref    : (3, W*Cin, W*Cout) bf16 banded conv weights (one per kh tap)
    # bias_ref : (1, W*Cout)    f32      conv bias, tiled over W
    # o_ref    : (1, H, W*Cout) f32      lane-dense output (W*Cout >= 128 here)
    # pad_ref  : VMEM (H+2, W*Cin) f32   H-padded normalized activation
    h_rows = o_ref.shape[1]
    wcin = x_ref.shape[2]
    wcout = o_ref.shape[2]

    # BN affine + ReLU in f32 (v5e VPU has no bf16); fused, never leaves VMEM.
    y = jnp.maximum(x_ref[0] * scale_ref[...] + shift_ref[...], 0.0)

    zero_row = jnp.zeros((1, wcin), jnp.float32)
    pad_ref[0:1, :] = zero_row                     # top halo
    pad_ref[h_rows + 1:h_rows + 2, :] = zero_row   # bottom halo
    pad_ref[1:h_rows + 1, :] = y                   # interior

    # 3 banded matmuls (one per kh tap): bf16 operands, f32 accumulation.
    acc = jnp.zeros((h_rows, wcout), jnp.float32)
    for kh in range(3):
        acc = acc + jnp.dot(
            pad_ref[kh:kh + h_rows, :].astype(jnp.bfloat16),
            m_ref[kh],
            preferred_element_type=jnp.float32)

    o_ref[0] = (acc + bias_ref[...]).astype(o_ref.dtype)


def fused_layer(h_flat, scale, shift, m_bf16, bias, width, c_out):
    """h_flat: (N, H, W*Cin) f32 -> (N, H, W*Cout) f32."""
    n, h_rows, wcin = h_flat.shape
    wcout = width * c_out
    scale_t = jnp.tile(scale, (1, width))                 # (1, W*Cin)
    shift_t = jnp.tile(shift, (1, width))                 # (1, W*Cin)
    bias_t = jnp.tile(bias.reshape(1, -1), (1, width))    # (1, W*Cout)
    return pl.pallas_call(
        fused_bn_relu_conv3x3_kernel,
        grid=(n,),
        in_specs=[pl.BlockSpec((1, h_rows, wcin), lambda i: (i, 0, 0)),
                  pl.BlockSpec((1, wcin), lambda i: (0, 0)),
                  pl.BlockSpec((1, wcin), lambda i: (0, 0)),
                  pl.BlockSpec((3, wcin, wcout), lambda i: (0, 0, 0)),
                  pl.BlockSpec((1, wcout), lambda i: (0, 0))],
        out_specs=pl.BlockSpec((1, h_rows, wcout), lambda i: (i, 0, 0)),
        out_shape=jax.ShapeDtypeStruct((n, h_rows, wcout), jnp.float32),
        scratch_shapes=[pltpu.VMEM((h_rows + 2, wcin), jnp.float32)],
        compiler_params=pltpu.CompilerParams(
            dimension_semantics=("parallel",),   # v7x: split images across 2 TCs
            vmem_limit_bytes=VMEM_LIMIT),
    )(h_flat, scale_t, shift_t, m_bf16, bias_t)


# ----------------------------------------------------------------------------
# Banded weight construction:  M[kh, wi*Cin+ci, wo*Cout+co] = W[kh, kw, ci, co]
# with kw = wi - wo + 1 (padding=1); out-of-range taps (the W halo) are zero.
# ----------------------------------------------------------------------------
def build_banded_weights(w_hwio, width):
    kh_, kw_, c_in, c_out = w_hwio.shape
    wi = jnp.arange(width)[:, None, None]
    wo = jnp.arange(width)[None, :, None]
    kw = jnp.arange(kw_)[None, None, :]
    ind = (wi == wo + kw - 1).astype(jnp.float32)          # (W, W, KW)
    m = jnp.einsum('iok,hkcd->hicod', ind, w_hwio)         # (KH, W, Cin, W, Cout)
    return m.reshape(kh_, width * c_in, width * c_out)


# ----------------------------------------------------------------------------
# ConvBlock forward
# ----------------------------------------------------------------------------
def conv_block_forward_nhwc(x_nhwc, params):
    n, h_rows, width, _ = x_nhwc.shape
    h = x_nhwc
    for p in params["layers"]:
        c_in = p["bn_gamma"].shape[0]
        c_out = p["b"].shape[0]
        # Global training-mode BN statistics (must be global -> own reduction pass).
        mean, var = batch_stats(h.reshape(n * h_rows * width, c_in))
        inv = lax.rsqrt(var + BN_EPS)
        scale = p["bn_gamma"].reshape(1, -1) * inv
        shift = p["bn_beta"].reshape(1, -1) - mean * scale
        # Fused normalize -> ReLU -> conv -> bias (activation stays in VMEM).
        h = fused_layer(h.reshape(n, h_rows, width * c_in),
                        scale, shift, p["m_bf16"], p["b"], width, c_out)
        h = h.reshape(n, h_rows, width, c_out)
    return h


def conv_block_forward(x_nchw, params):
    # NCHW wrapper for PyTorch parity; inside an NHWC pipeline call
    # conv_block_forward_nhwc directly and skip both transposes.
    h = jnp.transpose(x_nchw, (0, 2, 3, 1))
    h = conv_block_forward_nhwc(h, params)
    return jnp.transpose(h, (0, 3, 1, 2))


# ----------------------------------------------------------------------------
# Deterministic parameter init (shapes follow ConvLayer / BatchNorm2d defaults)
# ----------------------------------------------------------------------------
def init_params(key, c_in, c_out, width):
    k1, k2, k3, k4 = jax.random.split(key, 4)

    def conv_w(k, ci, co):
        # kaiming-uniform (fan_out, relu) as in ConvLayer; stored as HWIO
        bound = (6.0 / (co * 9)) ** 0.5
        w_oihw = jax.random.uniform(k, (co, ci, 3, 3), jnp.float32, -bound, bound)
        return jnp.transpose(w_oihw, (2, 3, 1, 0))

    def layer(kw_key, kb_key, ci, co):
        w = conv_w(kw_key, ci, co)
        return dict(
            bn_gamma=jnp.ones((ci,), jnp.float32),
            bn_beta=jnp.zeros((ci,), jnp.float32),
            w_hwio=w,
            m_bf16=build_banded_weights(w, width).astype(jnp.bfloat16),
            b=jax.random.uniform(kb_key, (co,), jnp.float32, -0.1, 0.1))

    return dict(layers=[layer(k1, k2, c_in, c_out), layer(k3, k4, c_out, c_out)])


# ----------------------------------------------------------------------------
# Pure-JAX reference (same bf16 MXU-boundary precision) for sanity check
# ----------------------------------------------------------------------------
def reference_forward(x_nchw, params):
    h = jnp.transpose(x_nchw, (0, 2, 3, 1)).astype(jnp.float32)
    for p in params["layers"]:
        n, hh, ww, c = h.shape
        hrc = h.reshape(n * hh * ww, c)
        mean = jnp.mean(hrc, axis=0, keepdims=True)
        var = jnp.mean(hrc * hrc, axis=0, keepdims=True) - mean * mean
        inv = lax.rsqrt(var + BN_EPS)
        scale = p["bn_gamma"].reshape(1, -1) * inv
        shift = p["bn_beta"].reshape(1, -1) - mean * scale
        a = jnp.maximum(h * scale.reshape(1, 1, 1, -1) + shift.reshape(1, 1, 1, -1), 0.0)
        h = lax.conv_general_dilated(
            a.astype(jnp.bfloat16), p["w_hwio"].astype(jnp.bfloat16),
            window_strides=(1, 1), padding=((1, 1), (1, 1)),
            dimension_numbers=("NHWC", "HWIO", "NHWC"),
            preferred_element_type=jnp.float32) + p["b"].reshape(1, 1, 1, -1)
    return jnp.transpose(h, (0, 3, 1, 2))


if __name__ == "__main__":
    key = jax.random.PRNGKey(0)
    kx, kp = jax.random.split(key)

    N, C_in, C_out, H, W = 2, 4, 8, 16, 16
    x = jax.random.normal(kx, (N, C_in, H, W), jnp.float32)   # NCHW, like PyTorch
    params = init_params(kp, C_in, C_out, W)

    out = jax.jit(conv_block_forward)(x, params)
    out = jax.block_until_ready(out)
    assert out.shape == (N, C_out, H, W), out.shape

    ref = jax.block_until_ready(reference_forward(x, params))
    # bf16 MXU inputs -> a handful of elements may differ by ~1 bf16 ulp across
    # the two layers; 2e-2 absolute is a comfortable sanity bound.
    max_err = float(jnp.max(jnp.abs(out - ref)))
    assert max_err < 2e-2, f"max abs error {max_err}"

    print("KERNEL_OK")
</pallas_src>

<mosaic_0001>
module attributes {stable_mosaic.version = 11 : i64} {
  func.func @bn_stats_kernel(%arg0: i32, %arg1: memref<256x4xf32, #tpu.memory_space<vmem>>, %arg2: memref<1x4xf32, #tpu.memory_space<vmem>>, %arg3: memref<1x4xf32, #tpu.memory_space<vmem>>) attributes {dimension_semantics = [#tpu.dimension_semantics<arbitrary>], iteration_bounds = array<i64: 2>, scalar_prefetch = 0 : i64, scratch_operands = 0 : i64, tpu.core_type = #tpu.core_type<tc>, window_params = [{transform_indices = @transform_0, window_bounds = array<i64: 256, 4>}, {pipeline_mode = #tpu.pipeline_mode<synchronous>, transform_indices = @transform_1, window_bounds = array<i64: 1, 4>}, {pipeline_mode = #tpu.pipeline_mode<synchronous>, transform_indices = @transform_2, window_bounds = array<i64: 1, 4>}]} {
    %c0_i32 = arith.constant 0 : i32
    %0 = arith.cmpi eq, %arg0, %c0_i32 : i32
    %1 = arith.extui %0 : i1 to i32
    %c0_i32_0 = arith.constant 0 : i32
    %2 = arith.cmpi ne, %1, %c0_i32_0 : i32
    scf.if %2 {
      %cst_11 = arith.constant 0.000000e+00 : f32
      %15 = vector.broadcast %cst_11 : f32 to vector<1x4xf32>
      %c0_12 = arith.constant 0 : index
      %c0_13 = arith.constant 0 : index
      %16 = vector.load %arg2[%c0_12, %c0_13] : memref<1x4xf32, #tpu.memory_space<vmem>>, vector<1x4xf32>
      tpu.vector_store %arg2[%c0_12, %c0_13], %15 {strides = array<i32>} : memref<1x4xf32, #tpu.memory_space<vmem>>, vector<1x4xf32>,
      %cst_14 = arith.constant 0.000000e+00 : f32
      %17 = vector.broadcast %cst_14 : f32 to vector<1x4xf32>
      %c0_15 = arith.constant 0 : index
      %c0_16 = arith.constant 0 : index
      %18 = vector.load %arg3[%c0_15, %c0_16] : memref<1x4xf32, #tpu.memory_space<vmem>>, vector<1x4xf32>
      tpu.vector_store %arg3[%c0_15, %c0_16], %17 {strides = array<i32>} : memref<1x4xf32, #tpu.memory_space<vmem>>, vector<1x4xf32>,
    } else {
    }
    %c0 = arith.constant 0 : index
    %c0_1 = arith.constant 0 : index
    %3 = vector.load %arg1[%c0, %c0_1] : memref<256x4xf32, #tpu.memory_space<vmem>>, vector<256x4xf32>
    %c0_2 = arith.constant 0 : index
    %c0_3 = arith.constant 0 : index
    %4 = vector.load %arg2[%c0_2, %c0_3] : memref<1x4xf32, #tpu.memory_space<vmem>>, vector<1x4xf32>
    %cst = arith.constant dense<0.000000e+00> : vector<4xf32>
    %5 = vector.multi_reduction <add>, %3, %cst [0] : vector<256x4xf32> to vector<4xf32>
    %6 = vector.shape_cast %5 : vector<4xf32> to vector<1x4xf32>
    %7 = arith.addf %4, %6 : vector<1x4xf32>
    %c0_4 = arith.constant 0 : index
    %c0_5 = arith.constant 0 : index
    %8 = vector.load %arg2[%c0_4, %c0_5] : memref<1x4xf32, #tpu.memory_space<vmem>>, vector<1x4xf32>
    tpu.vector_store %arg2[%c0_4, %c0_5], %7 {strides = array<i32>} : memref<1x4xf32, #tpu.memory_space<vmem>>, vector<1x4xf32>,
    %c0_6 = arith.constant 0 : index
    %c0_7 = arith.constant 0 : index
    %9 = vector.load %arg3[%c0_6, %c0_7] : memref<1x4xf32, #tpu.memory_space<vmem>>, vector<1x4xf32>
    %10 = arith.mulf %3, %3 : vector<256x4xf32>
    %cst_8 = arith.constant dense<0.000000e+00> : vector<4xf32>
    %11 = vector.multi_reduction <add>, %10, %cst_8 [0] : vector<256x4xf32> to vector<4xf32>
    %12 = vector.shape_cast %11 : vector<4xf32> to vector<1x4xf32>
    %13 = arith.addf %9, %12 : vector<1x4xf32>
    %c0_9 = arith.constant 0 : index
    %c0_10 = arith.constant 0 : index
    %14 = vector.load %arg3[%c0_9, %c0_10] : memref<1x4xf32, #tpu.memory_space<vmem>>, vector<1x4xf32>
    tpu.vector_store %arg3[%c0_9, %c0_10], %13 {strides = array<i32>} : memref<1x4xf32, #tpu.memory_space<vmem>>, vector<1x4xf32>,
    return
  }
  func.func @transform_0(%arg0: i32) -> (i32, i32) {
    %c0_i32 = arith.constant 0 : i32
    %c0_i32_0 = arith.constant 0 : i32
    return %arg0, %c0_i32 : i32, i32
  }
  func.func @transform_1(%arg0: i32) -> (i32, i32) {
    %c0_i32 = arith.constant 0 : i32
    %c0_i32_0 = arith.constant 0 : i32
    %c0_i32_1 = arith.constant 0 : i32
    return %c0_i32, %c0_i32_0 : i32, i32
  }
  func.func @transform_2(%arg0: i32) -> (i32, i32) {
    %c0_i32 = arith.constant 0 : i32
    %c0_i32_0 = arith.constant 0 : i32
    %c0_i32_1 = arith.constant 0 : i32
    return %c0_i32, %c0_i32_0 : i32, i32
  }
}

module attributes {stable_mosaic.version = 11 : i64} {
  func.func @fused_bn_relu_conv3x3_kernel(%arg0: i32, %arg1: memref<1x16x64xf32, #tpu.memory_space<vmem>>, %arg2: memref<1x64xf32, #tpu.memory_space<vmem>>, %arg3: memref<1x64xf32, #tpu.memory_space<vmem>>, %arg4: memref<3x64x128xbf16, #tpu.memory_space<vmem>>, %arg5: memref<1x128xf32, #tpu.memory_space<vmem>>, %arg6: memref<1x16x128xf32, #tpu.memory_space<vmem>>, %arg7: memref<18x64xf32, #tpu.memory_space<vmem>>) attributes {dimension_semantics = [#tpu.dimension_semantics<parallel>], iteration_bounds = array<i64: 2>, scalar_prefetch = 0 : i64, scratch_operands = 1 : i64, tpu.core_type = #tpu.core_type<tc>, window_params = [{transform_indices = @transform_0, window_bounds = array<i64: 1, 16, 64>}, {pipeline_mode = #tpu.pipeline_mode<synchronous>, transform_indices = @transform_1, window_bounds = array<i64: 1, 64>}, {pipeline_mode = #tpu.pipeline_mode<synchronous>, transform_indices = @transform_2, window_bounds = array<i64: 1, 64>}, {pipeline_mode = #tpu.pipeline_mode<synchronous>, transform_indices = @transform_3, window_bounds = array<i64: 3, 64, 128>}, {pipeline_mode = #tpu.pipeline_mode<synchronous>, transform_indices = @transform_4, window_bounds = array<i64: 1, 128>}, {transform_indices = @transform_5, window_bounds = array<i64: 1, 16, 128>}]} {
    %c0 = arith.constant 0 : index
    %c0_0 = arith.constant 0 : index
    %c0_1 = arith.constant 0 : index
    %0 = vector.load %arg1[%c0, %c0_0, %c0_1] : memref<1x16x64xf32, #tpu.memory_space<vmem>>, vector<1x16x64xf32>
    %1 = vector.shape_cast %0 : vector<1x16x64xf32> to vector<16x64xf32>
    %c0_2 = arith.constant 0 : index
    %c0_3 = arith.constant 0 : index
    %2 = vector.load %arg2[%c0_2, %c0_3] : memref<1x64xf32, #tpu.memory_space<vmem>>, vector<1x64xf32>
    %3 = vector.broadcast %2 : vector<1x64xf32> to vector<16x64xf32>
    %4 = arith.mulf %1, %3 : vector<16x64xf32>
    %c0_4 = arith.constant 0 : index
    %c0_5 = arith.constant 0 : index
    %5 = vector.load %arg3[%c0_4, %c0_5] : memref<1x64xf32, #tpu.memory_space<vmem>>, vector<1x64xf32>
    %6 = vector.broadcast %5 : vector<1x64xf32> to vector<16x64xf32>
    %7 = arith.addf %4, %6 : vector<16x64xf32>
    %cst = arith.constant 0.000000e+00 : f32
    %8 = vector.broadcast %cst : f32 to vector<16x64xf32>
    %9 = arith.maximumf %7, %8 : vector<16x64xf32>
    %cst_6 = arith.constant 0.000000e+00 : f32
    %10 = vector.broadcast %cst_6 : f32 to vector<1x64xf32>
    %c0_7 = arith.constant 0 : index
    %c0_8 = arith.constant 0 : index
    %11 = vector.load %arg7[%c0_7, %c0_8] : memref<18x64xf32, #tpu.memory_space<vmem>>, vector<1x64xf32>
    tpu.vector_store %arg7[%c0_7, %c0_8], %10 {strides = array<i32>} : memref<18x64xf32, #tpu.memory_space<vmem>>, vector<1x64xf32>,
    %c17 = arith.constant 17 : index
    %c0_9 = arith.constant 0 : index
    %12 = vector.load %arg7[%c17, %c0_9] : memref<18x64xf32, #tpu.memory_space<vmem>>, vector<1x64xf32>
    tpu.vector_store %arg7[%c17, %c0_9], %10 {strides = array<i32>} : memref<18x64xf32, #tpu.memory_space<vmem>>, vector<1x64xf32>,
    %c1 = arith.constant 1 : index
    %c0_10 = arith.constant 0 : index
    %13 = vector.load %arg7[%c1, %c0_10] : memref<18x64xf32, #tpu.memory_space<vmem>>, vector<16x64xf32>
    tpu.vector_store %arg7[%c1, %c0_10], %9 {strides = array<i32>} : memref<18x64xf32, #tpu.memory_space<vmem>>, vector<16x64xf32>,
    %cst_11 = arith.constant 0.000000e+00 : f32
    %14 = vector.broadcast %cst_11 : f32 to vector<16x128xf32>
    %c0_12 = arith.constant 0 : index
    %c0_13 = arith.constant 0 : index
    %15 = vector.load %arg7[%c0_12, %c0_13] : memref<18x64xf32, #tpu.memory_space<vmem>>, vector<16x64xf32>
    %16 = arith.truncf %15 : vector<16x64xf32> to vector<16x64xbf16>
    %c0_14 = arith.constant 0 : index
    %c0_15 = arith.constant 0 : index
    %c0_16 = arith.constant 0 : index
    %17 = vector.load %arg4[%c0_14, %c0_15, %c0_16] : memref<3x64x128xbf16, #tpu.memory_space<vmem>>, vector<1x64x128xbf16>
    %18 = vector.shape_cast %17 : vector<1x64x128xbf16> to vector<64x128xbf16>
    %cst_17 = arith.constant dense<0.000000e+00> : vector<16x128xf32>
    %19 = tpu.matmul %16, %18, %cst_17 {dimension_numbers = #tpu.dot_dimension_numbers<[1], [0], [0], [1], [0, 0, 1, 1], [], []>} : vector<16x64xbf16>, vector<64x128xbf16>, vector<16x128xf32> -> vector<16x128xf32>
    %20 = arith.addf %14, %19 : vector<16x128xf32>
    %c1_18 = arith.constant 1 : index
    %c0_19 = arith.constant 0 : index
    %21 = vector.load %arg7[%c1_18, %c0_19] : memref<18x64xf32, #tpu.memory_space<vmem>>, vector<16x64xf32>
    %22 = arith.truncf %21 : vector<16x64xf32> to vector<16x64xbf16>
    %c1_20 = arith.constant 1 : index
    %c0_21 = arith.constant 0 : index
    %c0_22 = arith.constant 0 : index
    %23 = vector.load %arg4[%c1_20, %c0_21, %c0_22] : memref<3x64x128xbf16, #tpu.memory_space<vmem>>, vector<1x64x128xbf16>
    %24 = vector.shape_cast %23 : vector<1x64x128xbf16> to vector<64x128xbf16>
    %cst_23 = arith.constant dense<0.000000e+00> : vector<16x128xf32>
    %25 = tpu.matmul %22, %24, %cst_23 {dimension_numbers = #tpu.dot_dimension_numbers<[1], [0], [0], [1], [0, 0, 1, 1], [], []>} : vector<16x64xbf16>, vector<64x128xbf16>, vector<16x128xf32> -> vector<16x128xf32>
    %26 = arith.addf %20, %25 : vector<16x128xf32>
    %c2 = arith.constant 2 : index
    %c0_24 = arith.constant 0 : index
    %27 = vector.load %arg7[%c2, %c0_24] : memref<18x64xf32, #tpu.memory_space<vmem>>, vector<16x64xf32>
    %28 = arith.truncf %27 : vector<16x64xf32> to vector<16x64xbf16>
    %c2_25 = arith.constant 2 : index
    %c0_26 = arith.constant 0 : index
    %c0_27 = arith.constant 0 : index
    %29 = vector.load %arg4[%c2_25, %c0_26, %c0_27] : memref<3x64x128xbf16, #tpu.memory_space<vmem>>, vector<1x64x128xbf16>
    %30 = vector.shape_cast %29 : vector<1x64x128xbf16> to vector<64x128xbf16>
    %cst_28 = arith.constant dense<0.000000e+00> : vector<16x128xf32>
    %31 = tpu.matmul %28, %30, %cst_28 {dimension_numbers = #tpu.dot_dimension_numbers<[1], [0], [0], [1], [0, 0, 1, 1], [], []>} : vector<16x64xbf16>, vector<64x128xbf16>, vector<16x128xf32> -> vector<16x128xf32>
    %32 = arith.addf %26, %31 : vector<16x128xf32>
    %c0_29 = arith.constant 0 : index
    %c0_30 = arith.constant 0 : index
    %33 = vector.load %arg5[%c0_29, %c0_30] : memref<1x128xf32, #tpu.memory_space<vmem>>, vector<1x128xf32>
    %34 = vector.broadcast %33 : vector<1x128xf32> to vector<16x128xf32>
    %35 = arith.addf %32, %34 : vector<16x128xf32>
    %c0_31 = arith.constant 0 : index
    %c0_32 = arith.constant 0 : index
    %c0_33 = arith.constant 0 : index
    %36 = vector.load %arg6[%c0_31, %c0_32, %c0_33] : memref<1x16x128xf32, #tpu.memory_space<vmem>>, vector<1x16x128xf32>
    %37 = vector.shape_cast %36 : vector<1x16x128xf32> to vector<16x128xf32>
    %38 = vector.shape_cast %35 : vector<16x128xf32> to vector<1x16x128xf32>
    tpu.vector_store %arg6[%c0_31, %c0_32, %c0_33], %38 {strides = array<i32>} : memref<1x16x128xf32, #tpu.memory_space<vmem>>, vector<1x16x128xf32>,
    return
  }
  func.func @transform_0(%arg0: i32) -> (i32, i32, i32) {
    %c0_i32 = arith.constant 0 : i32
    %c0_i32_0 = arith.constant 0 : i32
    %c0_i32_1 = arith.constant 0 : i32
    return %arg0, %c0_i32, %c0_i32_0 : i32, i32, i32
  }
  func.func @transform_1(%arg0: i32) -> (i32, i32) {
    %c0_i32 = arith.constant 0 : i32
    %c0_i32_0 = arith.constant 0 : i32
    %c0_i32_1 = arith.constant 0 : i32
    return %c0_i32, %c0_i32_0 : i32, i32
  }
  func.func @transform_2(%arg0: i32) -> (i32, i32) {
    %c0_i32 = arith.constant 0 : i32
    %c0_i32_0 = arith.constant 0 : i32
    %c0_i32_1 = arith.constant 0 : i32
    return %c0_i32, %c0_i32_0 : i32, i32
  }
  func.func @transform_3(%arg0: i32) -> (i32, i32, i32) {
    %c0_i32 = arith.constant 0 : i32
    %c0_i32_0 = arith.constant 0 : i32
    %c0_i32_1 = arith.constant 0 : i32
    %c0_i32_2 = arith.constant 0 : i32
    return %c0_i32, %c0_i32_0, %c0_i32_1 : i32, i32, i32
  }
  func.func @transform_4(%arg0: i32) -> (i32, i32) {
    %c0_i32 = arith.constant 0 : i32
    %c0_i32_0 = arith.constant 0 : i32
    %c0_i32_1 = arith.constant 0 : i32
    return %c0_i32, %c0_i32_0 : i32, i32
  }
  func.func @transform_5(%arg0: i32) -> (i32, i32, i32) {
    %c0_i32 = arith.constant 0 : i32
    %c0_i32_0 = arith.constant 0 : i32
    %c0_i32_1 = arith.constant 0 : i32
    return %arg0, %c0_i32, %c0_i32_0 : i32, i32, i32
  }
}

module attributes {stable_mosaic.version = 11 : i64} {
  func.func @bn_stats_kernel(%arg0: i32, %arg1: memref<256x8xf32, #tpu.memory_space<vmem>>, %arg2: memref<1x8xf32, #tpu.memory_space<vmem>>, %arg3: memref<1x8xf32, #tpu.memory_space<vmem>>) attributes {dimension_semantics = [#tpu.dimension_semantics<arbitrary>], iteration_bounds = array<i64: 2>, scalar_prefetch = 0 : i64, scratch_operands = 0 : i64, tpu.core_type = #tpu.core_type<tc>, window_params = [{transform_indices = @transform_0, window_bounds = array<i64: 256, 8>}, {pipeline_mode = #tpu.pipeline_mode<synchronous>, transform_indices = @transform_1, window_bounds = array<i64: 1, 8>}, {pipeline_mode = #tpu.pipeline_mode<synchronous>, transform_indices = @transform_2, window_bounds = array<i64: 1, 8>}]} {
    %c0_i32 = arith.constant 0 : i32
    %0 = arith.cmpi eq, %arg0, %c0_i32 : i32
    %1 = arith.extui %0 : i1 to i32
    %c0_i32_0 = arith.constant 0 : i32
    %2 = arith.cmpi ne, %1, %c0_i32_0 : i32
    scf.if %2 {
      %cst_11 = arith.constant 0.000000e+00 : f32
      %15 = vector.broadcast %cst_11 : f32 to vector<1x8xf32>
      %c0_12 = arith.constant 0 : index
      %c0_13 = arith.constant 0 : index
      %16 = vector.load %arg2[%c0_12, %c0_13] : memref<1x8xf32, #tpu.memory_space<vmem>>, vector<1x8xf32>
      tpu.vector_store %arg2[%c0_12, %c0_13], %15 {strides = array<i32>} : memref<1x8xf32, #tpu.memory_space<vmem>>, vector<1x8xf32>,
      %cst_14 = arith.constant 0.000000e+00 : f32
      %17 = vector.broadcast %cst_14 : f32 to vector<1x8xf32>
      %c0_15 = arith.constant 0 : index
      %c0_16 = arith.constant 0 : index
      %18 = vector.load %arg3[%c0_15, %c0_16] : memref<1x8xf32, #tpu.memory_space<vmem>>, vector<1x8xf32>
      tpu.vector_store %arg3[%c0_15, %c0_16], %17 {strides = array<i32>} : memref<1x8xf32, #tpu.memory_space<vmem>>, vector<1x8xf32>,
    } else {
    }
    %c0 = arith.constant 0 : index
    %c0_1 = arith.constant 0 : index
    %3 = vector.load %arg1[%c0, %c0_1] : memref<256x8xf32, #tpu.memory_space<vmem>>, vector<256x8xf32>
    %c0_2 = arith.constant 0 : index
    %c0_3 = arith.constant 0 : index
    %4 = vector.load %arg2[%c0_2, %c0_3] : memref<1x8xf32, #tpu.memory_space<vmem>>, vector<1x8xf32>
    %cst = arith.constant dense<0.000000e+00> : vector<8xf32>
    %5 = vector.multi_reduction <add>, %3, %cst [0] : vector<256x8xf32> to vector<8xf32>
    %6 = vector.shape_cast %5 : vector<8xf32> to vector<1x8xf32>
    %7 = arith.addf %4, %6 : vector<1x8xf32>
    %c0_4 = arith.constant 0 : index
    %c0_5 = arith.constant 0 : index
    %8 = vector.load %arg2[%c0_4, %c0_5] : memref<1x8xf32, #tpu.memory_space<vmem>>, vector<1x8xf32>
    tpu.vector_store %arg2[%c0_4, %c0_5], %7 {strides = array<i32>} : memref<1x8xf32, #tpu.memory_space<vmem>>, vector<1x8xf32>,
    %c0_6 = arith.constant 0 : index
    %c0_7 = arith.constant 0 : index
    %9 = vector.load %arg3[%c0_6, %c0_7] : memref<1x8xf32, #tpu.memory_space<vmem>>, vector<1x8xf32>
    %10 = arith.mulf %3, %3 : vector<256x8xf32>
    %cst_8 = arith.constant dense<0.000000e+00> : vector<8xf32>
    %11 = vector.multi_reduction <add>, %10, %cst_8 [0] : vector<256x8xf32> to vector<8xf32>
    %12 = vector.shape_cast %11 : vector<8xf32> to vector<1x8xf32>
    %13 = arith.addf %9, %12 : vector<1x8xf32>
    %c0_9 = arith.constant 0 : index
    %c0_10 = arith.constant 0 : index
    %14 = vector.load %arg3[%c0_9, %c0_10] : memref<1x8xf32, #tpu.memory_space<vmem>>, vector<1x8xf32>
    tpu.vector_store %arg3[%c0_9, %c0_10], %13 {strides = array<i32>} : memref<1x8xf32, #tpu.memory_space<vmem>>, vector<1x8xf32>,
    return
  }
  func.func @transform_0(%arg0: i32) -> (i32, i32) {
    %c0_i32 = arith.constant 0 : i32
    %c0_i32_0 = arith.constant 0 : i32
    return %arg0, %c0_i32 : i32, i32
  }
  func.func @transform_1(%arg0: i32) -> (i32, i32) {
    %c0_i32 = arith.constant 0 : i32
    %c0_i32_0 = arith.constant 0 : i32
    %c0_i32_1 = arith.constant 0 : i32
    return %c0_i32, %c0_i32_0 : i32, i32
  }
  func.func @transform_2(%arg0: i32) -> (i32, i32) {
    %c0_i32 = arith.constant 0 : i32
    %c0_i32_0 = arith.constant 0 : i32
    %c0_i32_1 = arith.constant 0 : i32
    return %c0_i32, %c0_i32_0 : i32, i32
  }
}

module attributes {stable_mosaic.version = 11 : i64} {
  func.func @fused_bn_relu_conv3x3_kernel(%arg0: i32, %arg1: memref<1x16x128xf32, #tpu.memory_space<vmem>>, %arg2: memref<1x128xf32, #tpu.memory_space<vmem>>, %arg3: memref<1x128xf32, #tpu.memory_space<vmem>>, %arg4: memref<3x128x128xbf16, #tpu.memory_space<vmem>>, %arg5: memref<1x128xf32, #tpu.memory_space<vmem>>, %arg6: memref<1x16x128xf32, #tpu.memory_space<vmem>>, %arg7: memref<18x128xf32, #tpu.memory_space<vmem>>) attributes {dimension_semantics = [#tpu.dimension_semantics<parallel>], iteration_bounds = array<i64: 2>, scalar_prefetch = 0 : i64, scratch_operands = 1 : i64, tpu.core_type = #tpu.core_type<tc>, window_params = [{transform_indices = @transform_0, window_bounds = array<i64: 1, 16, 128>}, {pipeline_mode = #tpu.pipeline_mode<synchronous>, transform_indices = @transform_1, window_bounds = array<i64: 1, 128>}, {pipeline_mode = #tpu.pipeline_mode<synchronous>, transform_indices = @transform_2, window_bounds = array<i64: 1, 128>}, {pipeline_mode = #tpu.pipeline_mode<synchronous>, transform_indices = @transform_3, window_bounds = array<i64: 3, 128, 128>}, {pipeline_mode = #tpu.pipeline_mode<synchronous>, transform_indices = @transform_4, window_bounds = array<i64: 1, 128>}, {transform_indices = @transform_5, window_bounds = array<i64: 1, 16, 128>}]} {
    %c0 = arith.constant 0 : index
    %c0_0 = arith.constant 0 : index
    %c0_1 = arith.constant 0 : index
    %0 = vector.load %arg1[%c0, %c0_0, %c0_1] : memref<1x16x128xf32, #tpu.memory_space<vmem>>, vector<1x16x128xf32>
    %1 = vector.shape_cast %0 : vector<1x16x128xf32> to vector<16x128xf32>
    %c0_2 = arith.constant 0 : index
    %c0_3 = arith.constant 0 : index
    %2 = vector.load %arg2[%c0_2, %c0_3] : memref<1x128xf32, #tpu.memory_space<vmem>>, vector<1x128xf32>
    %3 = vector.broadcast %2 : vector<1x128xf32> to vector<16x128xf32>
    %4 = arith.mulf %1, %3 : vector<16x128xf32>
    %c0_4 = arith.constant 0 : index
    %c0_5 = arith.constant 0 : index
    %5 = vector.load %arg3[%c0_4, %c0_5] : memref<1x128xf32, #tpu.memory_space<vmem>>, vector<1x128xf32>
    %6 = vector.broadcast %5 : vector<1x128xf32> to vector<16x128xf32>
    %7 = arith.addf %4, %6 : vector<16x128xf32>
    %cst = arith.constant 0.000000e+00 : f32
    %8 = vector.broadcast %cst : f32 to vector<16x128xf32>
    %9 = arith.maximumf %7, %8 : vector<16x128xf32>
    %cst_6 = arith.constant 0.000000e+00 : f32
    %10 = vector.broadcast %cst_6 : f32 to vector<1x128xf32>
    %c0_7 = arith.constant 0 : index
    %c0_8 = arith.constant 0 : index
    %11 = vector.load %arg7[%c0_7, %c0_8] : memref<18x128xf32, #tpu.memory_space<vmem>>, vector<1x128xf32>
    tpu.vector_store %arg7[%c0_7, %c0_8], %10 {strides = array<i32>} : memref<18x128xf32, #tpu.memory_space<vmem>>, vector<1x128xf32>,
    %c17 = arith.constant 17 : index
    %c0_9 = arith.constant 0 : index
    %12 = vector.load %arg7[%c17, %c0_9] : memref<18x128xf32, #tpu.memory_space<vmem>>, vector<1x128xf32>
    tpu.vector_store %arg7[%c17, %c0_9], %10 {strides = array<i32>} : memref<18x128xf32, #tpu.memory_space<vmem>>, vector<1x128xf32>,
    %c1 = arith.constant 1 : index
    %c0_10 = arith.constant 0 : index
    %13 = vector.load %arg7[%c1, %c0_10] : memref<18x128xf32, #tpu.memory_space<vmem>>, vector<16x128xf32>
    tpu.vector_store %arg7[%c1, %c0_10], %9 {strides = array<i32>} : memref<18x128xf32, #tpu.memory_space<vmem>>, vector<16x128xf32>,
    %cst_11 = arith.constant 0.000000e+00 : f32
    %14 = vector.broadcast %cst_11 : f32 to vector<16x128xf32>
    %c0_12 = arith.constant 0 : index
    %c0_13 = arith.constant 0 : index
    %15 = vector.load %arg7[%c0_12, %c0_13] : memref<18x128xf32, #tpu.memory_space<vmem>>, vector<16x128xf32>
    %16 = arith.truncf %15 : vector<16x128xf32> to vector<16x128xbf16>
    %c0_14 = arith.constant 0 : index
    %c0_15 = arith.constant 0 : index
    %c0_16 = arith.constant 0 : index
    %17 = vector.load %arg4[%c0_14, %c0_15, %c0_16] : memref<3x128x128xbf16, #tpu.memory_space<vmem>>, vector<1x128x128xbf16>
    %18 = vector.shape_cast %17 : vector<1x128x128xbf16> to vector<128x128xbf16>
    %cst_17 = arith.constant dense<0.000000e+00> : vector<16x128xf32>
    %19 = tpu.matmul %16, %18, %cst_17 {dimension_numbers = #tpu.dot_dimension_numbers<[1], [0], [0], [1], [0, 0, 1, 1], [], []>} : vector<16x128xbf16>, vector<128x128xbf16>, vector<16x128xf32> -> vector<16x128xf32>
    %20 = arith.addf %14, %19 : vector<16x128xf32>
    %c1_18 = arith.constant 1 : index
    %c0_19 = arith.constant 0 : index
    %21 = vector.load %arg7[%c1_18, %c0_19] : memref<18x128xf32, #tpu.memory_space<vmem>>, vector<16x128xf32>
    %22 = arith.truncf %21 : vector<16x128xf32> to vector<16x128xbf16>
    %c1_20 = arith.constant 1 : index
    %c0_21 = arith.constant 0 : index
    %c0_22 = arith.constant 0 : index
    %23 = vector.load %arg4[%c1_20, %c0_21, %c0_22] : memref<3x128x128xbf16, #tpu.memory_space<vmem>>, vector<1x128x128xbf16>
    %24 = vector.shape_cast %23 : vector<1x128x128xbf16> to vector<128x128xbf16>
    %cst_23 = arith.constant dense<0.000000e+00> : vector<16x128xf32>
    %25 = tpu.matmul %22, %24, %cst_23 {dimension_numbers = #tpu.dot_dimension_numbers<[1], [0], [0], [1], [0, 0, 1, 1], [], []>} : vector<16x128xbf16>, vector<128x128xbf16>, vector<16x128xf32> -> vector<16x128xf32>
    %26 = arith.addf %20, %25 : vector<16x128xf32>
    %c2 = arith.constant 2 : index
    %c0_24 = arith.constant 0 : index
    %27 = vector.load %arg7[%c2, %c0_24] : memref<18x128xf32, #tpu.memory_space<vmem>>, vector<16x128xf32>
    %28 = arith.truncf %27 : vector<16x128xf32> to vector<16x128xbf16>
    %c2_25 = arith.constant 2 : index
    %c0_26 = arith.constant 0 : index
    %c0_27 = arith.constant 0 : index
    %29 = vector.load %arg4[%c2_25, %c0_26, %c0_27] : memref<3x128x128xbf16, #tpu.memory_space<vmem>>, vector<1x128x128xbf16>
    %30 = vector.shape_cast %29 : vector<1x128x128xbf16> to vector<128x128xbf16>
    %cst_28 = arith.constant dense<0.000000e+00> : vector<16x128xf32>
    %31 = tpu.matmul %28, %30, %cst_28 {dimension_numbers = #tpu.dot_dimension_numbers<[1], [0], [0], [1], [0, 0, 1, 1], [], []>} : vector<16x128xbf16>, vector<128x128xbf16>, vector<16x128xf32> -> vector<16x128xf32>
    %32 = arith.addf %26, %31 : vector<16x128xf32>
    %c0_29 = arith.constant 0 : index
    %c0_30 = arith.constant 0 : index
    %33 = vector.load %arg5[%c0_29, %c0_30] : memref<1x128xf32, #tpu.memory_space<vmem>>, vector<1x128xf32>
    %34 = vector.broadcast %33 : vector<1x128xf32> to vector<16x128xf32>
    %35 = arith.addf %32, %34 : vector<16x128xf32>
    %c0_31 = arith.constant 0 : index
    %c0_32 = arith.constant 0 : index
    %c0_33 = arith.constant 0 : index
    %36 = vector.load %arg6[%c0_31, %c0_32, %c0_33] : memref<1x16x128xf32, #tpu.memory_space<vmem>>, vector<1x16x128xf32>
    %37 = vector.shape_cast %36 : vector<1x16x128xf32> to vector<16x128xf32>
    %38 = vector.shape_cast %35 : vector<16x128xf32> to vector<1x16x128xf32>
    tpu.vector_store %arg6[%c0_31, %c0_32, %c0_33], %38 {strides = array<i32>} : memref<1x16x128xf32, #tpu.memory_space<vmem>>, vector<1x16x128xf32>,
    return
  }
  func.func @transform_0(%arg0: i32) -> (i32, i32, i32) {
    %c0_i32 = arith.constant 0 : i32
    %c0_i32_0 = arith.constant 0 : i32
    %c0_i32_1 = arith.constant 0 : i32
    return %arg0, %c0_i32, %c0_i32_0 : i32, i32, i32
  }
  func.func @transform_1(%arg0: i32) -> (i32, i32) {
    %c0_i32 = arith.constant 0 : i32
    %c0_i32_0 = arith.constant 0 : i32
    %c0_i32_1 = arith.constant 0 : i32
    return %c0_i32, %c0_i32_0 : i32, i32
  }
  func.func @transform_2(%arg0: i32) -> (i32, i32) {
    %c0_i32 = arith.constant 0 : i32
    %c0_i32_0 = arith.constant 0 : i32
    %c0_i32_1 = arith.constant 0 : i32
    return %c0_i32, %c0_i32_0 : i32, i32
  }
  func.func @transform_3(%arg0: i32) -> (i32, i32, i32) {
    %c0_i32 = arith.constant 0 : i32
    %c0_i32_0 = arith.constant 0 : i32
    %c0_i32_1 = arith.constant 0 : i32
    %c0_i32_2 = arith.constant 0 : i32
    return %c0_i32, %c0_i32_0, %c0_i32_1 : i32, i32, i32
  }
  func.func @transform_4(%arg0: i32) -> (i32, i32) {
    %c0_i32 = arith.constant 0 : i32
    %c0_i32_0 = arith.constant 0 : i32
    %c0_i32_1 = arith.constant 0 : i32
    return %c0_i32, %c0_i32_0 : i32, i32
  }
  func.func @transform_5(%arg0: i32) -> (i32, i32, i32) {
    %c0_i32 = arith.constant 0 : i32
    %c0_i32_0 = arith.constant 0 : i32
    %c0_i32_1 = arith.constant 0 : i32
    return %arg0, %c0_i32, %c0_i32_0 : i32, i32, i32
  }
}

</mosaic_0001>

<bundles_post_ra>
// kernel: conv_block_forward.4
= control target key start
LH: loop header
LB: loop body
LE: loop exit
PB: predicated region body
PF: predicated region fallthrough
CT: control target
= control target key end

     0   :  { %s422_s9 = smov 0   ;;  %s552_s0 = inlined_call_operand.vmem [shape: f32[512,4], index: 0, kind: input, shape index: {}]   ;;  %s553_s1 = inlined_call_operand.vmem [shape: f32[1,4], index: 1, kind: output, shape index: {0}]   ;;  %s554_s2 = inlined_call_operand.vmem [shape: f32[1,4], index: 2, kind: output, shape index: {1}]  }
   0x1 LB: > { %s380_s10 = sadd.s32 4294967295, %s404_s9   ;;  %p383_p0 = scmp.ge.s32.totalorder %s404_s9, 1  ;;  %s404_s9 = sphi %s422_s9, %s13_s9  }
   0x2   : > { %p106_p1 = scmp.lt.s32.totalorder %s404_s9, 3 }
   0x4   : > { %p107_p2 = pnand %p383_p0, %p106_p1 }
   0x5   : > { %s384_s11 = sshll.u32 (!%p107_p2), %s380_s10, 5  ;;  %p386_p4 = scmp.ne.s32.totalorder (!%p107_p2), %s380_s10, 0 }
   0x6   : > { %110 = sbr.rel (%p107_p2) target bundleno = 102 (0x66), region = 24  ;;  %p124_p3 = scmp.lt.s32.totalorder (!%p107_p2), %s384_s11, 63 }
   0xb   : > { %s556_s11 = smov (!%p124_p3, %s384_s11), 63  ;;  %132 = sbr.rel (%p386_p4) target bundleno = 19 (0x13), region = 28 }
   0xc   : > { %s385_s12 = sshll.u32 %s556_s11, 3 }
   0xd   : > { %s433_s15 = scalar_lea.vmem %s552_s0, %s385_s12 }
  0x10   : > { %vm133_vm0 = vcmask 24576   ;;  %v406_v0 = vmov 0.0  }
  0x11   : > { %134 = vst.msk [vmem:[%s553_s1] sm:$0x1] %vm133_vm0, %v406_v0 }
  0x12   : > { %135 = vst.msk [vmem:[%s554_s2] sm:$0x1] %vm133_vm0, %v406_v0 }
  0x13 PF: > { %v136_v1 = vld [vmem:[%s433_s15] sm:$0xff]  ;;  %v137_v2 = vld [vmem:[%s433_s15 + $0x8] sm:$0xff]  ;;  %v138_v3 = vld [vmem:[%s433_s15 + $0x10] sm:$0xff]  ;;  %vm169_vm1 = vcmask 31744   ;;  %vm240_vm2 = vcmask 24576  }
  0x14   : > { %v170_v4 = vsel %vm169_vm1, %v136_v1, 0.0  ;;  %v171_v5 = vsel %vm169_vm1, %v137_v2, 0.0  ;;  %v173_v6 = vsel %vm169_vm1, %v138_v3, 0.0  ;;  %v139_v7 = vld [vmem:[%s433_s15 + $0x18] sm:$0xff]  ;;  %v140_v10 = vld [vmem:[%s433_s15 + $0x20] sm:$0xff]  ;;  %v141_v13 = vld [vmem:[%s433_s15 + $0x28] sm:$0xff]  ;;  %v243_v21 = vmul.f32 %v136_v1, %v136_v1 }
  0x15   : > { %v172_v8 = vadd.f32 %v171_v5, %v170_v4  ;;  %v175_v9 = vsel %vm169_vm1, %v139_v7, 0.0  ;;  %v177_v12 = vsel %vm169_vm1, %v140_v10, 0.0  ;;  %v179_v15 = vsel %vm169_vm1, %v141_v13, 0.0  ;;  %v142_v16 = vld [vmem:[%s433_s15 + $0x30] sm:$0xff]  ;;  %v143_v19 = vld [vmem:[%s433_s15 + $0x38] sm:$0xff]  ;;  %v144_v25 = vld [vmem:[%s433_s15 + $0x40] sm:$0xff] }
  0x16   : > { %v181_v18 = vsel %vm169_vm1, %v142_v16, 0.0  ;;  %v183_v22 = vsel %vm169_vm1, %v143_v19, 0.0  ;;  %v244_v23 = vmul.f32 %v137_v2, %v137_v2  ;;  %v245_v24 = vmul.f32 %v138_v3, %v138_v3  ;;  %v145_v29 = vld [vmem:[%s433_s15 + $0x48] sm:$0xff]  ;;  %v146_v36 = vld [vmem:[%s433_s15 + $0x50] sm:$0xff]  ;;  %v147_v42 = vld [vmem:[%s433_s15 + $0x58] sm:$0xff] }
  0x17   : > { %v174_v11 = vadd.f32 %v173_v6, %v172_v8  ;;  %v185_v27 = vsel %vm169_vm1, %v144_v25, 0.0  ;;  %v246_v28 = vmul.f32 %v139_v7, %v139_v7  ;;  %v275_v31 = vsel %vm169_vm1, %v243_v21, 0.0  ;;  %v148_v48 = vld [vmem:[%s433_s15 + $0x60] sm:$0xff]  ;;  %v149_v54 = vld [vmem:[%s433_s15 + $0x68] sm:$0xff]  ;;  %v150_v60 = vld [vmem:[%s433_s15 + $0x70] sm:$0xff] }
  0x18   : > { %v187_v32 = vsel %vm169_vm1, %v145_v29, 0.0  ;;  %v247_v33 = vmul.f32 %v140_v10, %v140_v10  ;;  %v276_v34 = vsel %vm169_vm1, %v244_v23, 0.0  ;;  %v278_v35 = vsel %vm169_vm1, %v245_v24, 0.0  ;;  %v151_v2 = vld [vmem:[%s433_s15 + $0x78] sm:$0xff]  ;;  %v152_v8 = vld [vmem:[%s433_s15 + $0x80] sm:$0xff] }
  0x19   : > { %v176_v14 = vadd.f32 %v175_v9, %v174_v11  ;;  %v277_v38 = vadd.f32 %v276_v34, %v275_v31  ;;  %v189_v39 = vsel %vm169_vm1, %v146_v36, 0.0  ;;  %v248_v40 = vmul.f32 %v141_v13, %v141_v13 }
  0x1a   : > { %v280_v41 = vsel %vm169_vm1, %v246_v28, 0.0  ;;  %v191_v45 = vsel %vm169_vm1, %v147_v42, 0.0  ;;  %v249_v46 = vmul.f32 %v142_v16, %v142_v16  ;;  %v282_v47 = vsel %vm169_vm1, %v247_v33, 0.0 }
  0x1b   : > { %v178_v17 = vadd.f32 %v177_v12, %v176_v14  ;;  %v279_v44 = vadd.f32 %v278_v35, %v277_v38  ;;  %v193_v51 = vsel %vm169_vm1, %v148_v48, 0.0  ;;  %v250_v52 = vmul.f32 %v143_v19, %v143_v19  ;;  %v153_v14 = vld [vmem:[%s433_s15 + $0x88] sm:$0xff] }
  0x1c   : > { %v284_v53 = vsel %vm169_vm1, %v248_v40, 0.0  ;;  %v195_v57 = vsel %vm169_vm1, %v149_v54, 0.0  ;;  %v251_v58 = vmul.f32 %v144_v25, %v144_v25  ;;  %v286_v59 = vsel %vm169_vm1, %v249_v46, 0.0  ;;  %v157_v38 = vld [vmem:[%s433_s15 + $0xa8] sm:$0xff] }
  0x1d   : > { %v180_v20 = vadd.f32 %v179_v15, %v178_v17  ;;  %v281_v50 = vadd.f32 %v280_v41, %v279_v44  ;;  %v197_v63 = vsel %vm169_vm1, %v150_v60, 0.0  ;;  %v252_v0 = vmul.f32 %v145_v29, %v145_v29  ;;  %v158_v44 = vld [vmem:[%s433_s15 + $0xb0] sm:$0xff] }
  0x1e   : > { %v288_v1 = vsel %vm169_vm1, %v250_v52, 0.0  ;;  %v199_v5 = vsel %vm169_vm1, %v151_v2, 0.0  ;;  %v253_v6 = vmul.f32 %v146_v36, %v146_v36  ;;  %v290_v7 = vsel %vm169_vm1, %v251_v58, 0.0 }
  0x1f   : > { %v182_v26 = vadd.f32 %v181_v18, %v180_v20  ;;  %v283_v56 = vadd.f32 %v282_v47, %v281_v50  ;;  %v201_v11 = vsel %vm169_vm1, %v152_v8, 0.0  ;;  %v254_v12 = vmul.f32 %v147_v42, %v147_v42  ;;  %v154_v20 = vld [vmem:[%s433_s15 + $0x90] sm:$0xff]  ;;  %v159_v50 = vld [vmem:[%s433_s15 + $0xb8] sm:$0xff] }
  0x20   : > { %v292_v13 = vsel %vm169_vm1, %v252_v0, 0.0  ;;  %v203_v17 = vsel %vm169_vm1, %v153_v14, 0.0  ;;  %v255_v18 = vmul.f32 %v148_v48, %v148_v48  ;;  %v294_v19 = vsel %vm169_vm1, %v253_v6, 0.0 }
  0x21   : > { %v184_v30 = vadd.f32 %v183_v22, %v182_v26  ;;  %v285_v62 = vadd.f32 %v284_v53, %v283_v56  ;;  %v205_v23 = vsel %vm169_vm1, %v154_v20, 0.0  ;;  %v256_v24 = vmul.f32 %v149_v54, %v149_v54  ;;  %v155_v26 = vld [vmem:[%s433_s15 + $0x98] sm:$0xff]  ;;  %v160_v56 = vld [vmem:[%s433_s15 + $0xc0] sm:$0xff] }
  0x22   : > { %v296_v25 = vsel %vm169_vm1, %v254_v12, 0.0  ;;  %v207_v29 = vsel %vm169_vm1, %v155_v26, 0.0  ;;  %v298_v31 = vsel %vm169_vm1, %v255_v18, 0.0  ;;  %v258_v36 = vmul.f32 %v151_v2, %v151_v2 }
  0x23   : > { %v186_v37 = vadd.f32 %v185_v27, %v184_v30  ;;  %v287_v4 = vadd.f32 %v286_v59, %v285_v62  ;;  %v257_v30 = vmul.f32 %v150_v60, %v150_v60  ;;  %v211_v41 = vsel %vm169_vm1, %v157_v38, 0.0  ;;  %v161_v62 = vld [vmem:[%s433_s15 + $0xc8] sm:$0xff] }
  0x24   : > { %v259_v42 = vmul.f32 %v152_v8, %v152_v8  ;;  %v213_v47 = vsel %vm169_vm1, %v158_v44, 0.0  ;;  %v260_v48 = vmul.f32 %v153_v14, %v153_v14  ;;  %v215_v53 = vsel %vm169_vm1, %v159_v50, 0.0 }
  0x25   : > { %v188_v43 = vadd.f32 %v187_v32, %v186_v37  ;;  %v289_v10 = vadd.f32 %v288_v1, %v287_v4  ;;  %v156_v32 = vld [vmem:[%s433_s15 + $0xa0] sm:$0xff]  ;;  %v300_v37 = vsel %vm169_vm1, %v256_v24, 0.0  ;;  %v261_v54 = vmul.f32 %v154_v20, %v154_v20  ;;  %v162_v4 = vld [vmem:[%s433_s15 + $0xd0] sm:$0xff] }
  0x26   : > { %v209_v35 = vsel %vm169_vm1, %v156_v32, 0.0  ;;  %v217_v59 = vsel %vm169_vm1, %v160_v56, 0.0  ;;  %v262_v60 = vmul.f32 %v155_v26, %v155_v26  ;;  %v219_v1 = vsel %vm169_vm1, %v161_v62, 0.0 }
  0x27   : > { %v190_v49 = vadd.f32 %v189_v39, %v188_v43  ;;  %v291_v16 = vadd.f32 %v290_v7, %v289_v10  ;;  %v302_v43 = vsel %vm169_vm1, %v257_v30, 0.0  ;;  %v263_v2 = vmul.f32 %v156_v32, %v156_v32  ;;  %v163_v10 = vld [vmem:[%s433_s15 + $0xd8] sm:$0xff] }
  0x28   : > { %v221_v7 = vsel %vm169_vm1, %v162_v4, 0.0  ;;  %v264_v8 = vmul.f32 %v157_v38, %v157_v38  ;;  %v265_v14 = vmul.f32 %v158_v44, %v158_v44  ;;  %v266_v20 = vmul.f32 %v159_v50, %v159_v50 }
  0x29   : > { %v192_v55 = vadd.f32 %v191_v45, %v190_v49  ;;  %v293_v22 = vadd.f32 %v292_v13, %v291_v16  ;;  %v304_v49 = vsel %vm169_vm1, %v258_v36, 0.0  ;;  %v223_v13 = vsel %vm169_vm1, %v163_v10, 0.0  ;;  %v164_v16 = vld [vmem:[%s433_s15 + $0xe0] sm:$0xff] }
  0x2a   : > { %v267_v26 = vmul.f32 %v160_v56, %v160_v56  ;;  %v268_v32 = vmul.f32 %v161_v62, %v161_v62  ;;  %v269_v38 = vmul.f32 %v162_v4, %v162_v4 }
  0x2b   : > { %v194_v61 = vadd.f32 %v193_v51, %v192_v55  ;;  %v295_v28 = vadd.f32 %v294_v19, %v293_v22  ;;  %v306_v55 = vsel %vm169_vm1, %v259_v42, 0.0  ;;  %v225_v19 = vsel %vm169_vm1, %v164_v16, 0.0  ;;  %v165_v22 = vld [vmem:[%s433_s15 + $0xe8] sm:$0xff] }
  0x2c   : > { %v270_v42 = vmul.f32 %v163_v10, %v163_v10  ;;  %v272_v50 = vmul.f32 %v165_v22, %v165_v22 }
  0x2d   : > { %v196_v3 = vadd.f32 %v195_v57, %v194_v61  ;;  %v297_v34 = vadd.f32 %v296_v25, %v295_v28  ;;  %v308_v61 = vsel %vm169_vm1, %v260_v48, 0.0  ;;  %v227_v25 = vsel %vm169_vm1, %v165_v22, 0.0  ;;  %v166_v28 = vld [vmem:[%s433_s15 + $0xf0] sm:$0xff] }
  0x2f   : > { %v198_v9 = vadd.f32 %v197_v63, %v196_v3  ;;  %v299_v40 = vadd.f32 %v298_v31, %v297_v34  ;;  %v310_v3 = vsel %vm169_vm1, %v261_v54, 0.0  ;;  %v229_v31 = vsel %vm169_vm1, %v166_v28, 0.0  ;;  %v167_v34 = vld [vmem:[%s433_s15 + $0xf8] sm:$0xff] }
  0x30   : > { %v273_v54 = vmul.f32 %v166_v28, %v166_v28 }
  0x31   : > { %v200_v15 = vadd.f32 %v199_v5, %v198_v9  ;;  %v301_v46 = vadd.f32 %v300_v37, %v299_v40  ;;  %v312_v9 = vsel %vm169_vm1, %v262_v60, 0.0  ;;  %v231_v37 = vsel %vm169_vm1, %v167_v34, 0.0 }
  0x32   : > { %v334_v62 = vsel %vm169_vm1, %v273_v54, 0.0 }
  0x33   : > { %v202_v21 = vadd.f32 %v201_v11, %v200_v15  ;;  %v303_v52 = vadd.f32 %v302_v43, %v301_v46  ;;  %v314_v15 = vsel %vm169_vm1, %v263_v2, 0.0  ;;  %v324_v43 = vsel %vm169_vm1, %v268_v32, 0.0 }
  0x34   : > { %v271_v46 = vmul.f32 %v164_v16, %v164_v16 }
  0x35   : > { %v204_v27 = vadd.f32 %v203_v17, %v202_v21  ;;  %v305_v58 = vadd.f32 %v304_v49, %v303_v52  ;;  %v316_v21 = vsel %vm169_vm1, %v264_v8, 0.0 }
  0x37   : > { %v206_v33 = vadd.f32 %v205_v23, %v204_v27  ;;  %v307_v0 = vadd.f32 %v306_v55, %v305_v58  ;;  %v318_v27 = vsel %vm169_vm1, %v265_v14, 0.0  ;;  %v330_v55 = vsel %vm169_vm1, %v271_v46, 0.0 }
  0x38   : > { %v274_v58 = vmul.f32 %v167_v34, %v167_v34 }
  0x39   : > { %v208_v39 = vadd.f32 %v207_v29, %v206_v33  ;;  %v309_v6 = vadd.f32 %v308_v61, %v307_v0  ;;  %v320_v33 = vsel %vm169_vm1, %v266_v20, 0.0 }
  0x3a   : > { %v336_v2 = vsel %vm169_vm1, %v274_v58, 0.0 }
  0x3b   : > { %v210_v45 = vadd.f32 %v209_v35, %v208_v39  ;;  %v311_v12 = vadd.f32 %v310_v3, %v309_v6  ;;  %v322_v39 = vsel %vm169_vm1, %v267_v26, 0.0 }
  0x3d   : > { %v212_v51 = vadd.f32 %v211_v41, %v210_v45  ;;  %v313_v18 = vadd.f32 %v312_v9, %v311_v12  ;;  %v242_v12 = vld [vmem:[%s554_s2] sm:$0x1] }
  0x3f   : > { %v214_v57 = vadd.f32 %v213_v47, %v212_v51  ;;  %v315_v24 = vadd.f32 %v314_v15, %v313_v18  ;;  %v326_v47 = vsel %vm169_vm1, %v269_v38, 0.0  ;;  %v328_v51 = vsel %vm169_vm1, %v270_v42, 0.0 }
  0x41   : > { %v216_v63 = vadd.f32 %v215_v53, %v214_v57  ;;  %v317_v30 = vadd.f32 %v316_v21, %v315_v24 }
  0x43   : > { %v218_v5 = vadd.f32 %v217_v59, %v216_v63  ;;  %v319_v36 = vadd.f32 %v318_v27, %v317_v30  ;;  %v332_v59 = vsel %vm169_vm1, %v272_v50, 0.0 }
  0x45   : > { %v220_v11 = vadd.f32 %v219_v1, %v218_v5  ;;  %v321_v41 = vadd.f32 %v320_v33, %v319_v36  ;;  %v168_v1 = vld [vmem:[%s553_s1] sm:$0x1] }
  0x47   : > { %v222_v17 = vadd.f32 %v221_v7, %v220_v11  ;;  %v323_v45 = vadd.f32 %v322_v39, %v321_v41 }
  0x49   : > { %v224_v23 = vadd.f32 %v223_v13, %v222_v17  ;;  %v325_v49 = vadd.f32 %v324_v43, %v323_v45 }
  0x4b   : > { %v226_v29 = vadd.f32 %v225_v19, %v224_v23  ;;  %v327_v53 = vadd.f32 %v326_v47, %v325_v49 }
  0x4d   : > { %v228_v35 = vadd.f32 %v227_v25, %v226_v29  ;;  %v329_v57 = vadd.f32 %v328_v51, %v327_v53 }
  0x4f   : > { %v230_v40 = vadd.f32 %v229_v31, %v228_v35  ;;  %v331_v61 = vadd.f32 %v330_v55, %v329_v57 }
  0x51   : > { %v232_v44 = vadd.f32 %v231_v37, %v230_v40  ;;  %v333_v0 = vadd.f32 %v332_v59, %v331_v61 }
  0x53   : > { %v233_v48 = vrot.slane %v232_v44, 4  ;;  %v335_v4 = vadd.f32 %v334_v62, %v333_v0 }
  0x55   : > { %v234_v52 = vadd.f32 %v233_v48, %v232_v44  ;;  %v337_v6 = vadd.f32 %v336_v2, %v335_v4 }
  0x57   : > { %v235_v56 = vrot.slane %v234_v52, 2  ;;  %v338_v7 = vrot.slane %v337_v6, 4 }
  0x59   : > { %v236_v60 = vadd.f32 %v235_v56, %v234_v52  ;;  %v339_v8 = vadd.f32 %v338_v7, %v337_v6 }
  0x5b   : > { %v237_v63 = vrot.slane %v236_v60, 1  ;;  %v340_v9 = vrot.slane %v339_v8, 2 }
  0x5d   : > { %v238_v3 = vadd.f32 %v237_v63, %v236_v60  ;;  %v341_v10 = vadd.f32 %v340_v9, %v339_v8 }
  0x5f   : > { %v239_v5 = vadd.f32 %v238_v3, %v168_v1  ;;  %v342_v11 = vrot.slane %v341_v10, 1 }
  0x61   : > { %241 = vst.msk [vmem:[%s553_s1] sm:$0x1] %vm240_vm2, %v239_v5  ;;  %v343_v13 = vadd.f32 %v342_v11, %v341_v10 }
  0x63   : > { %v344_v14 = vadd.f32 %v343_v13, %v242_v12 }
  0x65   : > { %345 = vst.msk [vmem:[%s554_s2] sm:$0x1] %vm240_vm2, %v344_v14 }
  0x66 PF: > { %s13_s9 = sadd.s32 1, %s404_s9  }
  0x67   : > { %p10_p5 = scmp.ge.s32.totalorder %s13_s9, 4  }
  0x69   :  { %12 = sbr.rel (!%p10_p5) target bundleno = 1 (0x1), region = 62 }

// kernel: conv_block_forward.6
= control target key start
LH: loop header
LB: loop body
LE: loop exit
PB: predicated region body
PF: predicated region fallthrough
CT: control target
= control target key end

     0   :  { %s422_s9 = smov 0   ;;  %s552_s0 = inlined_call_operand.vmem [shape: f32[512,8], index: 0, kind: input, shape index: {}]   ;;  %s553_s1 = inlined_call_operand.vmem [shape: f32[1,8], index: 1, kind: output, shape index: {0}]   ;;  %s554_s2 = inlined_call_operand.vmem [shape: f32[1,8], index: 2, kind: output, shape index: {1}]  }
   0x1 LB: > { %s380_s10 = sadd.s32 4294967295, %s404_s9   ;;  %p383_p0 = scmp.ge.s32.totalorder %s404_s9, 1  ;;  %s404_s9 = sphi %s422_s9, %s13_s9  }
   0x2   : > { %p106_p1 = scmp.lt.s32.totalorder %s404_s9, 3 }
   0x4   : > { %p107_p2 = pnand %p383_p0, %p106_p1 }
   0x5   : > { %s384_s11 = sshll.u32 (!%p107_p2), %s380_s10, 5  ;;  %p386_p4 = scmp.ne.s32.totalorder (!%p107_p2), %s380_s10, 0 }
   0x6   : > { %110 = sbr.rel (%p107_p2) target bundleno = 102 (0x66), region = 24  ;;  %p124_p3 = scmp.lt.s32.totalorder (!%p107_p2), %s384_s11, 63 }
   0xb   : > { %s556_s11 = smov (!%p124_p3, %s384_s11), 63  ;;  %132 = sbr.rel (%p386_p4) target bundleno = 19 (0x13), region = 28 }
   0xc   : > { %s385_s12 = sshll.u32 %s556_s11, 3 }
   0xd   : > { %s433_s15 = scalar_lea.vmem %s552_s0, %s385_s12 }
  0x10   : > { %vm133_vm0 = vcmask 57344   ;;  %v406_v0 = vmov 0.0  }
  0x11   : > { %134 = vst.msk [vmem:[%s553_s1] sm:$0x1] %vm133_vm0, %v406_v0 }
  0x12   : > { %135 = vst.msk [vmem:[%s554_s2] sm:$0x1] %vm133_vm0, %v406_v0 }
  0x13 PF: > { %v136_v1 = vld [vmem:[%s433_s15] sm:$0xff]  ;;  %v137_v2 = vld [vmem:[%s433_s15 + $0x8] sm:$0xff]  ;;  %v138_v3 = vld [vmem:[%s433_s15 + $0x10] sm:$0xff]  ;;  %vm169_vm1 = vcmask 64512   ;;  %vm240_vm2 = vcmask 57344  }
  0x14   : > { %v170_v4 = vsel %vm169_vm1, %v136_v1, 0.0  ;;  %v171_v5 = vsel %vm169_vm1, %v137_v2, 0.0  ;;  %v173_v6 = vsel %vm169_vm1, %v138_v3, 0.0  ;;  %v139_v7 = vld [vmem:[%s433_s15 + $0x18] sm:$0xff]  ;;  %v140_v10 = vld [vmem:[%s433_s15 + $0x20] sm:$0xff]  ;;  %v141_v13 = vld [vmem:[%s433_s15 + $0x28] sm:$0xff]  ;;  %v243_v21 = vmul.f32 %v136_v1, %v136_v1 }
  0x15   : > { %v172_v8 = vadd.f32 %v171_v5, %v170_v4  ;;  %v175_v9 = vsel %vm169_vm1, %v139_v7, 0.0  ;;  %v177_v12 = vsel %vm169_vm1, %v140_v10, 0.0  ;;  %v179_v15 = vsel %vm169_vm1, %v141_v13, 0.0  ;;  %v142_v16 = vld [vmem:[%s433_s15 + $0x30] sm:$0xff]  ;;  %v143_v19 = vld [vmem:[%s433_s15 + $0x38] sm:$0xff]  ;;  %v144_v25 = vld [vmem:[%s433_s15 + $0x40] sm:$0xff] }
  0x16   : > { %v181_v18 = vsel %vm169_vm1, %v142_v16, 0.0  ;;  %v183_v22 = vsel %vm169_vm1, %v143_v19, 0.0  ;;  %v244_v23 = vmul.f32 %v137_v2, %v137_v2  ;;  %v245_v24 = vmul.f32 %v138_v3, %v138_v3  ;;  %v145_v29 = vld [vmem:[%s433_s15 + $0x48] sm:$0xff]  ;;  %v146_v36 = vld [vmem:[%s433_s15 + $0x50] sm:$0xff]  ;;  %v147_v42 = vld [vmem:[%s433_s15 + $0x58] sm:$0xff] }
  0x17   : > { %v174_v11 = vadd.f32 %v173_v6, %v172_v8  ;;  %v185_v27 = vsel %vm169_vm1, %v144_v25, 0.0  ;;  %v246_v28 = vmul.f32 %v139_v7, %v139_v7  ;;  %v275_v31 = vsel %vm169_vm1, %v243_v21, 0.0  ;;  %v148_v48 = vld [vmem:[%s433_s15 + $0x60] sm:$0xff]  ;;  %v149_v54 = vld [vmem:[%s433_s15 + $0x68] sm:$0xff]  ;;  %v150_v60 = vld [vmem:[%s433_s15 + $0x70] sm:$0xff] }
  0x18   : > { %v187_v32 = vsel %vm169_vm1, %v145_v29, 0.0  ;;  %v247_v33 = vmul.f32 %v140_v10, %v140_v10  ;;  %v276_v34 = vsel %vm169_vm1, %v244_v23, 0.0  ;;  %v278_v35 = vsel %vm169_vm1, %v245_v24, 0.0  ;;  %v151_v2 = vld [vmem:[%s433_s15 + $0x78] sm:$0xff]  ;;  %v152_v8 = vld [vmem:[%s433_s15 + $0x80] sm:$0xff] }
  0x19   : > { %v176_v14 = vadd.f32 %v175_v9, %v174_v11  ;;  %v277_v38 = vadd.f32 %v276_v34, %v275_v31  ;;  %v189_v39 = vsel %vm169_vm1, %v146_v36, 0.0  ;;  %v248_v40 = vmul.f32 %v141_v13, %v141_v13 }
  0x1a   : > { %v280_v41 = vsel %vm169_vm1, %v246_v28, 0.0  ;;  %v191_v45 = vsel %vm169_vm1, %v147_v42, 0.0  ;;  %v249_v46 = vmul.f32 %v142_v16, %v142_v16  ;;  %v282_v47 = vsel %vm169_vm1, %v247_v33, 0.0 }
  0x1b   : > { %v178_v17 = vadd.f32 %v177_v12, %v176_v14  ;;  %v279_v44 = vadd.f32 %v278_v35, %v277_v38  ;;  %v193_v51 = vsel %vm169_vm1, %v148_v48, 0.0  ;;  %v250_v52 = vmul.f32 %v143_v19, %v143_v19  ;;  %v153_v14 = vld [vmem:[%s433_s15 + $0x88] sm:$0xff] }
  0x1c   : > { %v284_v53 = vsel %vm169_vm1, %v248_v40, 0.0  ;;  %v195_v57 = vsel %vm169_vm1, %v149_v54, 0.0  ;;  %v251_v58 = vmul.f32 %v144_v25, %v144_v25  ;;  %v286_v59 = vsel %vm169_vm1, %v249_v46, 0.0  ;;  %v157_v38 = vld [vmem:[%s433_s15 + $0xa8] sm:$0xff] }
  0x1d   : > { %v180_v20 = vadd.f32 %v179_v15, %v178_v17  ;;  %v281_v50 = vadd.f32 %v280_v41, %v279_v44  ;;  %v197_v63 = vsel %vm169_vm1, %v150_v60, 0.0  ;;  %v252_v0 = vmul.f32 %v145_v29, %v145_v29  ;;  %v158_v44 = vld [vmem:[%s433_s15 + $0xb0] sm:$0xff] }
  0x1e   : > { %v288_v1 = vsel %vm169_vm1, %v250_v52, 0.0  ;;  %v199_v5 = vsel %vm169_vm1, %v151_v2, 0.0  ;;  %v253_v6 = vmul.f32 %v146_v36, %v146_v36  ;;  %v290_v7 = vsel %vm169_vm1, %v251_v58, 0.0 }
  0x1f   : > { %v182_v26 = vadd.f32 %v181_v18, %v180_v20  ;;  %v283_v56 = vadd.f32 %v282_v47, %v281_v50  ;;  %v201_v11 = vsel %vm169_vm1, %v152_v8, 0.0  ;;  %v254_v12 = vmul.f32 %v147_v42, %v147_v42  ;;  %v154_v20 = vld [vmem:[%s433_s15 + $0x90] sm:$0xff]  ;;  %v159_v50 = vld [vmem:[%s433_s15 + $0xb8] sm:$0xff] }
  0x20   : > { %v292_v13 = vsel %vm169_vm1, %v252_v0, 0.0  ;;  %v203_v17 = vsel %vm169_vm1, %v153_v14, 0.0  ;;  %v255_v18 = vmul.f32 %v148_v48, %v148_v48  ;;  %v294_v19 = vsel %vm169_vm1, %v253_v6, 0.0 }
  0x21   : > { %v184_v30 = vadd.f32 %v183_v22, %v182_v26  ;;  %v285_v62 = vadd.f32 %v284_v53, %v283_v56  ;;  %v205_v23 = vsel %vm169_vm1, %v154_v20, 0.0  ;;  %v256_v24 = vmul.f32 %v149_v54, %v149_v54  ;;  %v155_v26 = vld [vmem:[%s433_s15 + $0x98] sm:$0xff]  ;;  %v160_v56 = vld [vmem:[%s433_s15 + $0xc0] sm:$0xff] }
  0x22   : > { %v296_v25 = vsel %vm169_vm1, %v254_v12, 0.0  ;;  %v207_v29 = vsel %vm169_vm1, %v155_v26, 0.0  ;;  %v298_v31 = vsel %vm169_vm1, %v255_v18, 0.0  ;;  %v258_v36 = vmul.f32 %v151_v2, %v151_v2 }
  0x23   : > { %v186_v37 = vadd.f32 %v185_v27, %v184_v30  ;;  %v287_v4 = vadd.f32 %v286_v59, %v285_v62  ;;  %v257_v30 = vmul.f32 %v150_v60, %v150_v60  ;;  %v211_v41 = vsel %vm169_vm1, %v157_v38, 0.0  ;;  %v161_v62 = vld [vmem:[%s433_s15 + $0xc8] sm:$0xff] }
  0x24   : > { %v259_v42 = vmul.f32 %v152_v8, %v152_v8  ;;  %v213_v47 = vsel %vm169_vm1, %v158_v44, 0.0  ;;  %v260_v48 = vmul.f32 %v153_v14, %v153_v14  ;;  %v215_v53 = vsel %vm169_vm1, %v159_v50, 0.0 }
  0x25   : > { %v188_v43 = vadd.f32 %v187_v32, %v186_v37  ;;  %v289_v10 = vadd.f32 %v288_v1, %v287_v4  ;;  %v156_v32 = vld [vmem:[%s433_s15 + $0xa0] sm:$0xff]  ;;  %v300_v37 = vsel %vm169_vm1, %v256_v24, 0.0  ;;  %v261_v54 = vmul.f32 %v154_v20, %v154_v20  ;;  %v162_v4 = vld [vmem:[%s433_s15 + $0xd0] sm:$0xff] }
  0x26   : > { %v209_v35 = vsel %vm169_vm1, %v156_v32, 0.0  ;;  %v217_v59 = vsel %vm169_vm1, %v160_v56, 0.0  ;;  %v262_v60 = vmul.f32 %v155_v26, %v155_v26  ;;  %v219_v1 = vsel %vm169_vm1, %v161_v62, 0.0 }
  0x27   : > { %v190_v49 = vadd.f32 %v189_v39, %v188_v43  ;;  %v291_v16 = vadd.f32 %v290_v7, %v289_v10  ;;  %v302_v43 = vsel %vm169_vm1, %v257_v30, 0.0  ;;  %v263_v2 = vmul.f32 %v156_v32, %v156_v32  ;;  %v163_v10 = vld [vmem:[%s433_s15 + $0xd8] sm:$0xff] }
  0x28   : > { %v221_v7 = vsel %vm169_vm1, %v162_v4, 0.0  ;;  %v264_v8 = vmul.f32 %v157_v38, %v157_v38  ;;  %v265_v14 = vmul.f32 %v158_v44, %v158_v44  ;;  %v266_v20 = vmul.f32 %v159_v50, %v159_v50 }
  0x29   : > { %v192_v55 = vadd.f32 %v191_v45, %v190_v49  ;;  %v293_v22 = vadd.f32 %v292_v13, %v291_v16  ;;  %v304_v49 = vsel %vm169_vm1, %v258_v36, 0.0  ;;  %v223_v13 = vsel %vm169_vm1, %v163_v10, 0.0  ;;  %v164_v16 = vld [vmem:[%s433_s15 + $0xe0] sm:$0xff] }
  0x2a   : > { %v267_v26 = vmul.f32 %v160_v56, %v160_v56  ;;  %v268_v32 = vmul.f32 %v161_v62, %v161_v62  ;;  %v269_v38 = vmul.f32 %v162_v4, %v162_v4 }
  0x2b   : > { %v194_v61 = vadd.f32 %v193_v51, %v192_v55  ;;  %v295_v28 = vadd.f32 %v294_v19, %v293_v22  ;;  %v306_v55 = vsel %vm169_vm1, %v259_v42, 0.0  ;;  %v225_v19 = vsel %vm169_vm1, %v164_v16, 0.0  ;;  %v165_v22 = vld [vmem:[%s433_s15 + $0xe8] sm:$0xff] }
  0x2c   : > { %v270_v42 = vmul.f32 %v163_v10, %v163_v10  ;;  %v272_v50 = vmul.f32 %v165_v22, %v165_v22 }
  0x2d   : > { %v196_v3 = vadd.f32 %v195_v57, %v194_v61  ;;  %v297_v34 = vadd.f32 %v296_v25, %v295_v28  ;;  %v308_v61 = vsel %vm169_vm1, %v260_v48, 0.0  ;;  %v227_v25 = vsel %vm169_vm1, %v165_v22, 0.0  ;;  %v166_v28 = vld [vmem:[%s433_s15 + $0xf0] sm:$0xff] }
  0x2f   : > { %v198_v9 = vadd.f32 %v197_v63, %v196_v3  ;;  %v299_v40 = vadd.f32 %v298_v31, %v297_v34  ;;  %v310_v3 = vsel %vm169_vm1, %v261_v54, 0.0  ;;  %v229_v31 = vsel %vm169_vm1, %v166_v28, 0.0  ;;  %v167_v34 = vld [vmem:[%s433_s15 + $0xf8] sm:$0xff] }
  0x30   : > { %v273_v54 = vmul.f32 %v166_v28, %v166_v28 }
  0x31   : > { %v200_v15 = vadd.f32 %v199_v5, %v198_v9  ;;  %v301_v46 = vadd.f32 %v300_v37, %v299_v40  ;;  %v312_v9 = vsel %vm169_vm1, %v262_v60, 0.0  ;;  %v231_v37 = vsel %vm169_vm1, %v167_v34, 0.0 }
  0x32   : > { %v334_v62 = vsel %vm169_vm1, %v273_v54, 0.0 }
  0x33   : > { %v202_v21 = vadd.f32 %v201_v11, %v200_v15  ;;  %v303_v52 = vadd.f32 %v302_v43, %v301_v46  ;;  %v314_v15 = vsel %vm169_vm1, %v263_v2, 0.0  ;;  %v324_v43 = vsel %vm169_vm1, %v268_v32, 0.0 }
  0x34   : > { %v271_v46 = vmul.f32 %v164_v16, %v164_v16 }
  0x35   : > { %v204_v27 = vadd.f32 %v203_v17, %v202_v21  ;;  %v305_v58 = vadd.f32 %v304_v49, %v303_v52  ;;  %v316_v21 = vsel %vm169_vm1, %v264_v8, 0.0 }
  0x37   : > { %v206_v33 = vadd.f32 %v205_v23, %v204_v27  ;;  %v307_v0 = vadd.f32 %v306_v55, %v305_v58  ;;  %v318_v27 = vsel %vm169_vm1, %v265_v14, 0.0  ;;  %v330_v55 = vsel %vm169_vm1, %v271_v46, 0.0 }
  0x38   : > { %v274_v58 = vmul.f32 %v167_v34, %v167_v34 }
  0x39   : > { %v208_v39 = vadd.f32 %v207_v29, %v206_v33  ;;  %v309_v6 = vadd.f32 %v308_v61, %v307_v0  ;;  %v320_v33 = vsel %vm169_vm1, %v266_v20, 0.0 }
  0x3a   : > { %v336_v2 = vsel %vm169_vm1, %v274_v58, 0.0 }
  0x3b   : > { %v210_v45 = vadd.f32 %v209_v35, %v208_v39  ;;  %v311_v12 = vadd.f32 %v310_v3, %v309_v6  ;;  %v322_v39 = vsel %vm169_vm1, %v267_v26, 0.0 }
  0x3d   : > { %v212_v51 = vadd.f32 %v211_v41, %v210_v45  ;;  %v313_v18 = vadd.f32 %v312_v9, %v311_v12  ;;  %v242_v12 = vld [vmem:[%s554_s2] sm:$0x1] }
  0x3f   : > { %v214_v57 = vadd.f32 %v213_v47, %v212_v51  ;;  %v315_v24 = vadd.f32 %v314_v15, %v313_v18  ;;  %v326_v47 = vsel %vm169_vm1, %v269_v38, 0.0  ;;  %v328_v51 = vsel %vm169_vm1, %v270_v42, 0.0 }
  0x41   : > { %v216_v63 = vadd.f32 %v215_v53, %v214_v57  ;;  %v317_v30 = vadd.f32 %v316_v21, %v315_v24 }
  0x43   : > { %v218_v5 = vadd.f32 %v217_v59, %v216_v63  ;;  %v319_v36 = vadd.f32 %v318_v27, %v317_v30  ;;  %v332_v59 = vsel %vm169_vm1, %v272_v50, 0.0 }
  0x45   : > { %v220_v11 = vadd.f32 %v219_v1, %v218_v5  ;;  %v321_v41 = vadd.f32 %v320_v33, %v319_v36  ;;  %v168_v1 = vld [vmem:[%s553_s1] sm:$0x1] }
  0x47   : > { %v222_v17 = vadd.f32 %v221_v7, %v220_v11  ;;  %v323_v45 = vadd.f32 %v322_v39, %v321_v41 }
  0x49   : > { %v224_v23 = vadd.f32 %v223_v13, %v222_v17  ;;  %v325_v49 = vadd.f32 %v324_v43, %v323_v45 }
  0x4b   : > { %v226_v29 = vadd.f32 %v225_v19, %v224_v23  ;;  %v327_v53 = vadd.f32 %v326_v47, %v325_v49 }
  0x4d   : > { %v228_v35 = vadd.f32 %v227_v25, %v226_v29  ;;  %v329_v57 = vadd.f32 %v328_v51, %v327_v53 }
  0x4f   : > { %v230_v40 = vadd.f32 %v229_v31, %v228_v35  ;;  %v331_v61 = vadd.f32 %v330_v55, %v329_v57 }
  0x51   : > { %v232_v44 = vadd.f32 %v231_v37, %v230_v40  ;;  %v333_v0 = vadd.f32 %v332_v59, %v331_v61 }
  0x53   : > { %v233_v48 = vrot.slane %v232_v44, 4  ;;  %v335_v4 = vadd.f32 %v334_v62, %v333_v0 }
  0x55   : > { %v234_v52 = vadd.f32 %v233_v48, %v232_v44  ;;  %v337_v6 = vadd.f32 %v336_v2, %v335_v4 }
  0x57   : > { %v235_v56 = vrot.slane %v234_v52, 2  ;;  %v338_v7 = vrot.slane %v337_v6, 4 }
  0x59   : > { %v236_v60 = vadd.f32 %v235_v56, %v234_v52  ;;  %v339_v8 = vadd.f32 %v338_v7, %v337_v6 }
  0x5b   : > { %v237_v63 = vrot.slane %v236_v60, 1  ;;  %v340_v9 = vrot.slane %v339_v8, 2 }
  0x5d   : > { %v238_v3 = vadd.f32 %v237_v63, %v236_v60  ;;  %v341_v10 = vadd.f32 %v340_v9, %v339_v8 }
  0x5f   : > { %v239_v5 = vadd.f32 %v238_v3, %v168_v1  ;;  %v342_v11 = vrot.slane %v341_v10, 1 }
  0x61   : > { %241 = vst.msk [vmem:[%s553_s1] sm:$0x1] %vm240_vm2, %v239_v5  ;;  %v343_v13 = vadd.f32 %v342_v11, %v341_v10 }
  0x63   : > { %v344_v14 = vadd.f32 %v343_v13, %v242_v12 }
  0x65   : > { %345 = vst.msk [vmem:[%s554_s2] sm:$0x1] %vm240_vm2, %v344_v14 }
  0x66 PF: > { %s13_s9 = sadd.s32 1, %s404_s9  }
  0x67   : > { %p10_p5 = scmp.ge.s32.totalorder %s13_s9, 4  }
  0x69   :  { %12 = sbr.rel (!%p10_p5) target bundleno = 1 (0x1), region = 62 }

// kernel: conv_block_forward.5
= control target key start
LH: loop header
LB: loop body
LE: loop exit
PB: predicated region body
PF: predicated region fallthrough
CT: control target
= control target key end

     0   :  { %s614_s18 = smov 0   ;;  %s688_s0 = inlined_call_operand.vmem [shape: f32[2,16,64], index: 0, kind: input, shape index: {}]   ;;  %s689_s1 = inlined_call_operand.vmem [shape: f32[1,64], index: 1, kind: input, shape index: {}]   ;;  %s690_s2 = inlined_call_operand.vmem [shape: f32[1,64], index: 2, kind: input, shape index: {}]   ;;  %s691_s3 = inlined_call_operand.vmem [shape: bf16[3,64,128], index: 3, kind: input, shape index: {}]   ;;  %s692_s4 = inlined_call_operand.vmem [shape: f32[1,128], index: 4, kind: input, shape index: {}]   ;;  %s693_s5 = inlined_call_operand.vmem [shape: f32[2,16,128], index: 5, kind: output, shape index: {}]  }
   0x1 LB: > { %s471_s19 = sadd.s32 4294967295, %s581_s18   ;;  %p475_p0 = scmp.ge.s32.totalorder %s581_s18, 1  ;;  %s581_s18 = sphi %s614_s18, %s15_s18  }
   0x2   : > { %p187_p1 = scmp.lt.s32.totalorder %s581_s18, 3 }
   0x4   : > { %p188_p2 = pnand %p475_p0, %p187_p1 }
   0x5   : > { %p215_p3 = scmp.lt.s32.totalorder (!%p188_p2), %s471_s19, 1 }
   0x6   : > { %191 = sbr.rel (%p188_p2) target bundleno = 179 (0xb3), region = 40 }
   0xb   : > { %v558_v0 = vld [vmem:[%s691_s3 + $0x38] sm:$0xff]  ;;  %vm242_vm0 = vcmask 516096   ;;  %v557_v3 = vld [vmem:[%s691_s3 + $0x30] sm:$0xff]  ;;  %s695_s19 = smov (!%p215_p3, %s471_s19), 1  ;;  %v583_v5 = vmov 0.0   ;;  %v556_v7 = vld [vmem:[%s691_s3 + $0x28] sm:$0xff] }
   0xc   : > { %v554_v1 = vld [vmem:[%s691_s3 + $0x18] sm:$0xff]  ;;  %302 = vmatpush.bf16.msra.mxu0 %v558_v0  ;;  %v553_v4 = vld [vmem:[%s691_s3 + $0x10] sm:$0xff]  ;;  %243 = vst.msk [vmem:[#allocation2] sm:$0x1] %vm242_vm0, %v583_v5  ;;  %s549_s9 = sshll.u32 %s695_s19, 4  ;;  %v552_v10 = vld [vmem:[%s691_s3 + $0x8] sm:$0xff] }
   0xd   : > { %v562_v2 = vld [vmem:[%s691_s3 + $0x58] sm:$0xff]  ;;  %343 = vmatpush.bf16.msra.mxu1 %v554_v1  ;;  %v561_v6 = vld [vmem:[%s691_s3 + $0x50] sm:$0xff]  ;;  %244 = vst.msk [vmem:[#allocation2 + $0x11] sm:$0x1] %vm242_vm0, %v583_v5  ;;  %v572_v8 = vld [vmem:[%s689_s1] ss:$0 sm:$0xff]  ;;  %s219_s14 = scalar_lea.vmem %s688_s0, %s549_s9  ;;  %s224_s8 = scalar_lea.vmem %s693_s5, %s549_s9 }
   0xe   : > { %396 = vmatpush.bf16.msra.mxu2 %v562_v2  ;;  %v573_v9 = vld [vmem:[%s690_s2] ss:$0 sm:$0xff]  ;;  %v227_v12 = vld [vmem:[%s219_s14 + $0x8] sm:$0xff]  ;;  %vm245_vm1 = vcmask 523264  }
   0xf   : > { %v226_v11 = vld [vmem:[%s219_s14] sm:$0xff]  ;;  %v560_v13 = vld [vmem:[%s691_s3 + $0x48] sm:$0xff]  ;;  %v233_v15 = vmul.f32 %v572_v8, %v227_v12 }
  0x10   : > { %303 = vmatpush.bf16.msra.mxu0 %v557_v3  ;;  %v232_v14 = vmul.f32 %v572_v8, %v226_v11  ;;  %v555_v18 = vld [vmem:[%s691_s3 + $0x20] sm:$0xff] }
  0x11   : > { %344 = vmatpush.bf16.msra.mxu1 %v553_v4  ;;  %v239_v17 = vadd.f32 %v573_v9, %v233_v15  ;;  %v551_v19 = vld [vmem:[%s691_s3] sm:$0xff] }
  0x12   : > { %397 = vmatpush.bf16.msra.mxu2 %v561_v6  ;;  %v238_v16 = vadd.f32 %v573_v9, %v232_v14  ;;  %v559_v20 = vld [vmem:[%s691_s3 + $0x40] sm:$0xff] }
  0x13   : > { %v241_v22 = vmax.f32 %v239_v17, 0.0  ;;  %v574_v35 = vld [vmem:[%s692_s4] ss:$0 sm:$0xff] }
  0x14   : > { %304 = vmatpush.bf16.msra.mxu0 %v556_v7  ;;  %v240_v21 = vmax.f32 %v238_v16, 0.0 }
  0x15   : > { %345 = vmatpush.bf16.msra.mxu1 %v552_v10  ;;  %247 = vst.msk [vmem:[#allocation2 + $0x9] sm:$0xff] %vm245_vm1, %v241_v22 }
  0x16   : > { %398 = vmatpush.bf16.msra.mxu2 %v560_v13  ;;  %246 = vst.msk [vmem:[#allocation2 + $0x1] sm:$0xff] %vm245_vm1, %v240_v21 }
  0x18   : > { %305 = vmatpush.bf16.msra.mxu0 %v555_v18 }
  0x19   : > { %346 = vmatpush.bf16.msra.mxu1 %v551_v19 }
  0x1a   : > { %399 = vmatpush.bf16.msra.mxu2 %v559_v20 }
  0x1c   : > { %v260_v25 = vld [vmem:[#allocation2 + $0x9] sm:$0xff] }
  0x1d   : > { %v259_v23 = vld [vmem:[#allocation2 + $0x1] sm:$0xff]  ;;  %v354_v30 = vld [vmem:[#allocation2 + $0xa] sm:$0xff] }
  0x1e   : > { %v248_v24 = vld [vmem:[#allocation2] sm:$0xff]  ;;  %v249_v26 = vld [vmem:[#allocation2 + $0x8] sm:$0xff]  ;;  %v261_v28 = vpack.c.bf16 %v260_v25, %v259_v23 }
  0x1f   : > { %v353_v27 = vld [vmem:[#allocation2 + $0x2] sm:$0xff]  ;;  %v250_v29 = vpack.c.bf16 %v249_v26, %v248_v24 }
  0x20   : > { %v355_v31 = vpack.c.bf16 %v354_v30, %v353_v27  ;;  %504 = vmatmul.msk.bf16.vlgmr.msra.gmra.mxu0 %vm245_vm1, %v261_v28 }
  0x21   : > { %521 = vmatmul.msk.bf16.vlgmr.msra.gmra.mxu1 %vm245_vm1, %v250_v29 }
  0x22   : > { %546 = vmatmul.msk.bf16.vlgmr.msra.gmra.mxu2 %vm245_vm1, %v355_v31 }
  0x9d   : > { %v307_v32 = vpop.f32.mrf.mxu0 }
  0x9e   : > { %v348_v33 = vpop.f32.mrf.mxu1 }
  0x9f   : > { %v349_v34 = vadd.f32 %v348_v33, %v307_v32 }
  0xa5   : > { %v401_v36 = vpop.f32.mrf.mxu2  ;;  %v309_v39 = vpop.f32.mrf.mxu0 }
  0xa6   : > { %v406_v37 = vadd.f32 %v401_v36, %v349_v34  ;;  %v350_v40 = vpop.f32.mrf.mxu1 }
  0xa7   : > { %v351_v41 = vadd.f32 %v350_v40, %v309_v39 }
  0xa8   : > { %v412_v38 = vadd.f32 %v574_v35, %v406_v37 }
  0xaa   : > { %414 = vst [vmem:[%s224_s8] sm:$0xff] %v412_v38 }
  0xad   : > { %v403_v42 = vpop.f32.mrf.mxu2 }
  0xae   : > { %v407_v43 = vadd.f32 %v403_v42, %v351_v41 }
  0xb0   : > { %v413_v44 = vadd.f32 %v574_v35, %v407_v43 }
  0xb2   : > { %415 = vst [vmem:[%s224_s8 + $0x8] sm:$0xff] %v413_v44 }
  0xb3 PF: > { %s15_s18 = sadd.s32 1, %s581_s18  }
  0xb4   : > { %p12_p4 = scmp.ge.s32.totalorder %s15_s18, 4  }
  0xb6   :  { %14 = sbr.rel (!%p12_p4) target bundleno = 1 (0x1), region = 72 }

// kernel: conv_block_forward.7
= control target key start
LH: loop header
LB: loop body
LE: loop exit
PB: predicated region body
PF: predicated region fallthrough
CT: control target
= control target key end

     0   :  { %s771_s18 = smov 0   ;;  %s876_s0 = inlined_call_operand.vmem [shape: f32[2,16,128], index: 0, kind: input, shape index: {}]   ;;  %s877_s1 = inlined_call_operand.vmem [shape: f32[1,128], index: 1, kind: input, shape index: {}]   ;;  %s878_s2 = inlined_call_operand.vmem [shape: f32[1,128], index: 2, kind: input, shape index: {}]   ;;  %s879_s3 = inlined_call_operand.vmem [shape: bf16[3,128,128], index: 3, kind: input, shape index: {}]   ;;  %s880_s4 = inlined_call_operand.vmem [shape: f32[1,128], index: 4, kind: input, shape index: {}]   ;;  %s881_s5 = inlined_call_operand.vmem [shape: f32[2,16,128], index: 5, kind: output, shape index: {}]  }
   0x1 LB: > { %s555_s19 = sadd.s32 4294967295, %s738_s18   ;;  %p559_p0 = scmp.ge.s32.totalorder %s738_s18, 1  ;;  %s738_s18 = sphi %s771_s18, %s15_s18  }
   0x2   : > { %p187_p1 = scmp.lt.s32.totalorder %s738_s18, 3 }
   0x4   : > { %p188_p2 = pnand %p559_p0, %p187_p1 }
   0x5   : > { %p215_p3 = scmp.lt.s32.totalorder (!%p188_p2), %s555_s19, 1 }
   0x6   : > { %191 = sbr.rel (%p188_p2) target bundleno = 190 (0xbe), region = 40 }
   0xb   : > { %v711_v0 = vld [vmem:[%s879_s3 + $0x78] sm:$0xff]  ;;  %v740_v3 = vmov 0.0   ;;  %v710_v4 = vld [vmem:[%s879_s3 + $0x70] sm:$0xff]  ;;  %s883_s19 = smov (!%p215_p3, %s555_s19), 1  ;;  %v709_v7 = vld [vmem:[%s879_s3 + $0x68] sm:$0xff] }
   0xc   : > { %v703_v1 = vld [vmem:[%s879_s3 + $0x38] sm:$0xff]  ;;  %241 = vst [vmem:[#allocation2] sm:$0x1] %v740_v3  ;;  %332 = vmatpush.bf16.msra.mxu0 %v711_v0  ;;  %v702_v5 = vld [vmem:[%s879_s3 + $0x30] sm:$0xff]  ;;  %s694_s7 = sshll.u32 %s883_s19, 4  ;;  %v701_v8 = vld [vmem:[%s879_s3 + $0x28] sm:$0xff] }
   0xd   : > { %v719_v2 = vld [vmem:[%s879_s3 + $0xb8] sm:$0xff]  ;;  %394 = vmatpush.bf16.msra.mxu1 %v703_v1  ;;  %242 = vst [vmem:[#allocation2 + $0x11] sm:$0x1] %v740_v3  ;;  %v718_v6 = vld [vmem:[%s879_s3 + $0xb0] sm:$0xff]  ;;  %s219_s10 = scalar_lea.vmem %s876_s0, %s694_s7  ;;  %v717_v9 = vld [vmem:[%s879_s3 + $0xa8] sm:$0xff]  ;;  %s224_s11 = scalar_lea.vmem %s881_s5, %s694_s7 }
   0xe   : > { %476 = vmatpush.bf16.msra.mxu2 %v719_v2  ;;  %v225_v10 = vld [vmem:[%s219_s10] sm:$0xff]  ;;  %v226_v11 = vld [vmem:[%s219_s10 + $0x8] sm:$0xff]  ;;  %v707_v21 = vld [vmem:[%s879_s3 + $0x58] sm:$0xff] }
   0xf   : > { %v729_v12 = vld [vmem:[%s877_s1] ss:$0 sm:$0xff]  ;;  %v699_v22 = vld [vmem:[%s879_s3 + $0x18] sm:$0xff]  ;;  %v706_v26 = vld [vmem:[%s879_s3 + $0x50] sm:$0xff] }
  0x10   : > { %333 = vmatpush.bf16.msra.mxu0 %v710_v4  ;;  %v730_v13 = vld [vmem:[%s878_s2] ss:$0 sm:$0xff]  ;;  %v231_v17 = vmul.f32 %v729_v12, %v225_v10  ;;  %v232_v18 = vmul.f32 %v729_v12, %v226_v11  ;;  %v715_v23 = vld [vmem:[%s879_s3 + $0x98] sm:$0xff]  ;;  %v698_v27 = vld [vmem:[%s879_s3 + $0x10] sm:$0xff] }
  0x11   : > { %395 = vmatpush.bf16.msra.mxu1 %v702_v5  ;;  %v708_v14 = vld [vmem:[%s879_s3 + $0x60] sm:$0xff]  ;;  %v714_v28 = vld [vmem:[%s879_s3 + $0x90] sm:$0xff]  ;;  %v705_v29 = vld [vmem:[%s879_s3 + $0x48] sm:$0xff] }
  0x12   : > { %477 = vmatpush.bf16.msra.mxu2 %v718_v6  ;;  %v700_v15 = vld [vmem:[%s879_s3 + $0x20] sm:$0xff]  ;;  %v237_v19 = vadd.f32 %v730_v13, %v231_v17  ;;  %v238_v20 = vadd.f32 %v730_v13, %v232_v18  ;;  %v697_v30 = vld [vmem:[%s879_s3 + $0x8] sm:$0xff] }
  0x13   : > { %v716_v16 = vld [vmem:[%s879_s3 + $0xa0] sm:$0xff]  ;;  %v713_v31 = vld [vmem:[%s879_s3 + $0x88] sm:$0xff] }
  0x14   : > { %334 = vmatpush.bf16.msra.mxu0 %v709_v7  ;;  %v239_v24 = vmax.f32 %v237_v19, 0.0  ;;  %v240_v25 = vmax.f32 %v238_v20, 0.0  ;;  %v704_v32 = vld [vmem:[%s879_s3 + $0x40] sm:$0xff] }
  0x15   : > { %396 = vmatpush.bf16.msra.mxu1 %v701_v8  ;;  %v696_v33 = vld [vmem:[%s879_s3] sm:$0xff] }
  0x16   : > { %478 = vmatpush.bf16.msra.mxu2 %v717_v9  ;;  %243 = vst [vmem:[#allocation2 + $0x1] sm:$0xff] %v239_v24  ;;  %v712_v36 = vld [vmem:[%s879_s3 + $0x80] sm:$0xff]  ;;  %v266_v39 = vpack.c.bf16 %v240_v25, %v239_v24 }
  0x17   : > { %244 = vst [vmem:[#allocation2 + $0x9] sm:$0xff] %v240_v25  ;;  %v731_v45 = vld [vmem:[%s880_s4] ss:$0 sm:$0xff] }
  0x18   : > { %335 = vmatpush.bf16.msra.mxu0 %v708_v14 }
  0x19   : > { %397 = vmatpush.bf16.msra.mxu1 %v700_v15 }
  0x1a   : > { %479 = vmatpush.bf16.msra.mxu2 %v716_v16 }
  0x1c   : > { %336 = vmatpush.bf16.msra.mxu0 %v707_v21 }
  0x1d   : > { %398 = vmatpush.bf16.msra.mxu1 %v699_v22  ;;  %v245_v34 = vld [vmem:[#allocation2] sm:$0xff] }
  0x1e   : > { %480 = vmatpush.bf16.msra.mxu2 %v715_v23  ;;  %v246_v35 = vld [vmem:[#allocation2 + $0x8] sm:$0xff] }
  0x1f   : > { %v408_v37 = vld [vmem:[#allocation2 + $0x2] sm:$0xff]  ;;  %v409_v38 = vld [vmem:[#allocation2 + $0xa] sm:$0xff]  ;;  %v247_v40 = vpack.c.bf16 %v246_v35, %v245_v34 }
  0x20   : > { %337 = vmatpush.bf16.msra.mxu0 %v706_v26  ;;  %v410_v41 = vpack.c.bf16 %v409_v38, %v408_v37 }
  0x21   : > { %399 = vmatpush.bf16.msra.mxu1 %v698_v27 }
  0x22   : > { %481 = vmatpush.bf16.msra.mxu2 %v714_v28 }
  0x24   : > { %338 = vmatpush.bf16.msra.mxu0 %v705_v29 }
  0x25   : > { %400 = vmatpush.bf16.msra.mxu1 %v697_v30 }
  0x26   : > { %482 = vmatpush.bf16.msra.mxu2 %v713_v31 }
  0x28   : > { %339 = vmatpush.bf16.msra.mxu0 %v704_v32 }
  0x29   : > { %401 = vmatpush.bf16.msra.mxu1 %v696_v33 }
  0x2a   : > { %483 = vmatpush.bf16.msra.mxu2 %v712_v36 }
  0x2b   : > { %340 = vmatmul.bf16.vlgmr.msra.gmra.mxu0 %v266_v39 }
  0x2c   : > { %402 = vmatmul.bf16.vlgmr.msra.gmra.mxu1 %v247_v40 }
  0x2d   : > { %484 = vmatmul.bf16.vlgmr.msra.gmra.mxu2 %v410_v41 }
  0xa8   : > { %v341_v42 = vpop.f32.mrf.mxu0 }
  0xa9   : > { %v403_v43 = vpop.f32.mrf.mxu1 }
  0xaa   : > { %v404_v44 = vadd.f32 %v403_v43, %v341_v42 }
  0xb0   : > { %v485_v46 = vpop.f32.mrf.mxu2  ;;  %v343_v49 = vpop.f32.mrf.mxu0 }
  0xb1   : > { %v490_v47 = vadd.f32 %v485_v46, %v404_v44  ;;  %v405_v50 = vpop.f32.mrf.mxu1 }
  0xb2   : > { %v406_v51 = vadd.f32 %v405_v50, %v343_v49 }
  0xb3   : > { %v496_v48 = vadd.f32 %v731_v45, %v490_v47 }
  0xb5   : > { %498 = vst [vmem:[%s224_s11] sm:$0xff] %v496_v48 }
  0xb8   : > { %v487_v52 = vpop.f32.mrf.mxu2 }
  0xb9   : > { %v491_v53 = vadd.f32 %v487_v52, %v406_v51 }
  0xbb   : > { %v497_v54 = vadd.f32 %v731_v45, %v491_v53 }
  0xbd   : > { %499 = vst [vmem:[%s224_s11 + $0x8] sm:$0xff] %v497_v54 }
  0xbe PF: > { %s15_s18 = sadd.s32 1, %s738_s18  }
  0xbf   : > { %p12_p4 = scmp.ge.s32.totalorder %s15_s18, 4  }
  0xc1   :  { %14 = sbr.rel (!%p12_p4) target bundleno = 1 (0x1), region = 72 }

</bundles_post_ra>
